<compile_context>
chip_gen: v7x
topology: tpu7x:2x2x1
jax: 0.10.0
libtpu: 0.0.40
codegen_flags: <defaults>
</compile_context>

<pallas_src>
import functools

import jax
import jax.numpy as jnp
from jax import lax
from jax.experimental import pallas as pl
from jax.experimental.pallas import tpu as pltpu


def _fcn_kernel(n_act, unroll, x_ref, w1_ref, b1_ref, wh_ref, bh_ref,
                wf_ref, bf_ref, o_ref):
    """One batch tile of the full forward pass (all weights resident in VMEM).

    x_ref : [TM, 2]     f32   input tile (batch rows on sublanes)
    w1_ref: [2, W]      f32   fc1 weight (in x out)
    b1_ref: [1, W]      f32   fc1 bias
    wh_ref: [Ha, W, W]  bf16  activated hidden weights (Ha = max(depth-3, 1))
    bh_ref: [Ha, 1, W]  f32   activated hidden biases
    wf_ref: [W, 8]      bf16  fused (last-hidden @ fc_final) weight, 2 -> 8 lanes
    bf_ref: [1, 8]      f32   fused bias, 2 -> 8 lanes
    o_ref : [TM, 8]     f32   output tile (real outputs in cols 0:2)
    n_act : static count of activated hidden layers actually present (depth-3)
    """
    x = x_ref[...]

    # fc1 + abs on the VPU: a K=2 MXU matmul is >98% waste; two broadcast FMAs
    # per lane are effectively free and shorten the serial layer chain.
    h = jnp.abs(
        x[:, 0:1] * w1_ref[0:1, :] + x[:, 1:2] * w1_ref[1:2, :] + b1_ref[...]
    )

    # Activated hidden layers on the MXU: bf16 operands, f32 accumulation.
    # fori_loop (not a Python loop) keeps code size / vreg pressure flat for
    # deep configs; dynamic leading-axis indexing of wh_ref/bh_ref is cheap.
    def layer(i, h):
        return jnp.abs(
            jnp.dot(h.astype(jnp.bfloat16), wh_ref[i],
                    preferred_element_type=jnp.float32)
            + bh_ref[i]
        )

    h = lax.fori_loop(0, n_act, layer, h, unroll=unroll)

    # Fused (last hidden -> fc_final) layer, no activation: slim 8-lane store.
    o_ref[...] = (
        jnp.dot(h.astype(jnp.bfloat16), wf_ref[...],
                preferred_element_type=jnp.float32)
        + bf_ref[...]
    ).astype(o_ref.dtype)


def _choose_tm(n, tm_req):
    """Largest tile <= tm_req that still leaves >= 2 grid steps (v7x: 2 TCs)."""
    tm = max(16, min(int(tm_req), 4096))
    while tm > 16 and pl.cdiv(n, tm) < 2:
        tm //= 2
    return max(16, (tm // 16) * 16)   # multiple of 16 for bf16 sublane packing


def _vmem_limit_bytes(tm, width, n_act_pad):
    """Conservative VMEM budget (lane/sublane-padded sizes) + slack."""
    lanes = lambda c: ((c + 127) // 128) * 128
    subl = lambda r: ((r + 7) // 8) * 8
    w_lane = lanes(width)
    weight_bytes = (
        subl(2) * w_lane * 4 + subl(1) * w_lane * 4              # w1, b1
        + n_act_pad * subl(width) * w_lane * 2                   # wh (bf16)
        + n_act_pad * subl(1) * w_lane * 4                       # bh
        + subl(width) * 128 * 2 + subl(1) * 128 * 4              # fused wf, bf
    ) * 2                                                        # buffering headroom
    io_bytes = 2 * tm * 128 * 4 + 2 * tm * 128 * 4               # 2x-buffered x, out
    act_bytes = 6 * tm * w_lane * 4                              # live activations
    total = weight_bytes + io_bytes + act_bytes + (8 << 20)
    return int(min(max(total, 32 << 20), 64 << 20))


def new_fcn_forward(x, params, *, tm=2048, single_buffer_weights=True):
    """Wrapper: fuses/pads params, tiles the batch axis, invokes the kernel."""
    w1, b1, wh, bh, wf, bf = params
    n, f_in = x.shape
    assert f_in == 2
    width = w1.shape[1]
    n_hidden = wh.shape[0]
    assert n_hidden >= 1

    # --- Algebraic fusion: last hidden layer (no activation) into fc_final. ---
    # Done in f32 before any bf16 cast to avoid double rounding.
    wf_fused = wh[n_hidden - 1] @ wf                 # [W, 2]
    bf_fused = bh[n_hidden - 1] @ wf + bf            # [1, 2]

    n_act = n_hidden - 1                             # activated hidden layers
    n_act_pad = max(n_act, 1)
    if n_act > 0:
        wh_act = wh[:n_act].astype(jnp.bfloat16)     # [Ha, W, W]
        bh_act = bh[:n_act]                          # [Ha, 1, W]
    else:
        # Dummy single layer; fori_loop(0, 0) never reads it.
        wh_act = jnp.zeros((1, width, width), jnp.bfloat16)
        bh_act = jnp.zeros((1, 1, width), jnp.float32)

    # Slim, 8-lane fused final layer (real outputs in cols 0:2).
    wf_p = (jnp.zeros((width, 8), jnp.float32)
            .at[:, :2].set(wf_fused).astype(jnp.bfloat16))
    bf_p = jnp.zeros((1, 8), jnp.float32).at[:, :2].set(bf_fused)

    # --- Batch tiling. ---
    tm = _choose_tm(n, tm)
    n_pad = pl.cdiv(n, tm) * tm
    if n_pad != n:
        x = jnp.pad(x, ((0, n_pad - n), (0, 0)))
    grid = (n_pad // tm,)

    flops = 2 * n_pad * (2 * width + n_act * width * width + width * 8)
    bytes_accessed = (
        n_pad * 2 * 4 + int(wh_act.size) * 2 + int(wf_p.size) * 2
        + (int(w1.size) + int(b1.size) + int(bh_act.size) + int(bf_p.size)) * 4
        + n_pad * 8 * 4
    )

    const2 = lambda i: (0, 0)
    const3 = lambda i: (0, 0, 0)
    if single_buffer_weights:
        # Constant-index weights: a second pipeline buffer is pure VMEM waste.
        wspec2 = lambda shape: pl.BlockSpec(shape, const2,
                                            pipeline_mode=pl.Buffered(1))
        wspec3 = lambda shape: pl.BlockSpec(shape, const3,
                                            pipeline_mode=pl.Buffered(1))
    else:
        wspec2 = lambda shape: pl.BlockSpec(shape, const2)
        wspec3 = lambda shape: pl.BlockSpec(shape, const3)

    kernel = functools.partial(_fcn_kernel, n_act, True if n_act <= 8 else 2)

    # TODO(synk): for large depth*width (Ha*W*W*2B beyond ~20 MiB) stream wh per
    # layer via memory_space=pl.ANY + make_async_copy double-buffering instead
    # of keeping it grid-resident (v7x has only 64 MiB VMEM per TensorCore).
    out = pl.pallas_call(
        kernel,
        out_shape=jax.ShapeDtypeStruct((n_pad, 8), jnp.float32),
        grid_spec=pltpu.PrefetchScalarGridSpec(
            num_scalar_prefetch=0,
            grid=grid,
            in_specs=[
                pl.BlockSpec((tm, 2), lambda i: (i, 0)),       # x
                wspec2((2, width)),                            # w1
                wspec2((1, width)),                            # b1
                wspec3((n_act_pad, width, width)),             # wh (activated)
                wspec3((n_act_pad, 1, width)),                 # bh (activated)
                wspec2((width, 8)),                            # wf (fused, padded)
                wspec2((1, 8)),                                # bf (fused, padded)
            ],
            out_specs=pl.BlockSpec((tm, 8), lambda i: (i, 0)),
        ),
        compiler_params=pltpu.CompilerParams(
            dimension_semantics=("parallel",),
            vmem_limit_bytes=_vmem_limit_bytes(tm, width, n_act_pad),
        ),
        cost_estimate=pl.CostEstimate(
            flops=flops, transcendentals=0, bytes_accessed=bytes_accessed),
    )(x, w1, b1, wh_act, bh_act, wf_p, bf_p)

    return out[:n, :2]


def init_new_fcn_params(key, depth, width):
    """Deterministic xavier_normal_ weights, zero biases (as in _init_weight).

    Weights are returned pre-transposed to [in_features, out_features].
    """
    assert depth >= 3, "NewFCN forward requires at least one hidden fc layer"

    def xavier_normal(k, fan_in, fan_out):
        std = jnp.sqrt(2.0 / (fan_in + fan_out))
        # PyTorch stores Linear weight as [out, in]; we transpose to [in, out].
        w = std * jax.random.normal(k, (fan_out, fan_in), dtype=jnp.float32)
        return w.T

    n_hidden = depth - 2
    keys = jax.random.split(key, 2 + n_hidden)

    w1 = xavier_normal(keys[0], 2, width)                      # [2, W]
    b1 = jnp.zeros((1, width), dtype=jnp.float32)              # [1, W]

    wh = jnp.stack(
        [xavier_normal(keys[1 + i], width, width) for i in range(n_hidden)]
    )                                                          # [H, W, W]
    bh = jnp.zeros((n_hidden, 1, width), dtype=jnp.float32)    # [H, 1, W]

    wf = xavier_normal(keys[1 + n_hidden], width, 2)           # [W, 2]
    bf = jnp.zeros((1, 2), dtype=jnp.float32)                  # [1, 2]

    return (w1, b1, wh, bh, wf, bf)


def new_fcn_reference(x, params):
    """Pure-JAX f32 reference of the PyTorch forward, for correctness check."""
    w1, b1, wh, bh, wf, bf = params
    h = jnp.abs(x @ w1 + b1)
    n_hidden = wh.shape[0]
    for i in range(n_hidden - 1):
        h = jnp.abs(h @ wh[i] + bh[i])
    h = h @ wh[n_hidden - 1] + bh[n_hidden - 1]
    return h @ wf + bf


if __name__ == "__main__":
    depth, width = 4, 32      # 2 hidden Linear(W,W) layers; last one fused into fc_final
    batch = 512               # _choose_tm picks tm=256 -> 2 grid steps

    key = jax.random.PRNGKey(0)
    k_params, k_x = jax.random.split(key)

    params = init_new_fcn_params(k_params, depth, width)
    x = jax.random.normal(k_x, (batch, 2), dtype=jnp.float32)

    fwd = jax.jit(functools.partial(new_fcn_forward, params=params))
    try:
        out = fwd(x)
    except Exception:
        # Fallback if this Pallas build rejects single-buffered (Buffered(1))
        # weight specs on the main grid: use default double buffering.
        fwd = jax.jit(functools.partial(new_fcn_forward, params=params,
                                        single_buffer_weights=False))
        out = fwd(x)
    jax.block_until_ready(out)

    ref = new_fcn_reference(x, params)
    assert out.shape == (batch, 2)
    # bf16 matmul operands w/ f32 accumulation vs pure-f32 reference -> tiny rounding.
    err = float(jnp.max(jnp.abs(out - ref)))
    assert err < 5e-2, f"mismatch vs reference, max abs err = {err}"

    print("KERNEL_OK")
</pallas_src>

<mosaic_0001>
module attributes {stable_mosaic.version = 11 : i64} {
  func.func @_fcn_kernel(%arg0: i32, %arg1: memref<256x2xf32, #tpu.memory_space<vmem>>, %arg2: memref<2x32xf32, #tpu.memory_space<vmem>>, %arg3: memref<1x32xf32, #tpu.memory_space<vmem>>, %arg4: memref<1x32x32xbf16, #tpu.memory_space<vmem>>, %arg5: memref<1x1x32xf32, #tpu.memory_space<vmem>>, %arg6: memref<32x8xbf16, #tpu.memory_space<vmem>>, %arg7: memref<1x8xf32, #tpu.memory_space<vmem>>, %arg8: memref<256x8xf32, #tpu.memory_space<vmem>>) attributes {dimension_semantics = [#tpu.dimension_semantics<parallel>], iteration_bounds = array<i64: 2>, scalar_prefetch = 0 : i64, scratch_operands = 0 : i64, tpu.core_type = #tpu.core_type<tc>, window_params = [{transform_indices = @transform_0, window_bounds = array<i64: 256, 2>}, {pipeline_mode = #tpu.pipeline_mode<synchronous>, transform_indices = @transform_1, window_bounds = array<i64: 2, 32>}, {pipeline_mode = #tpu.pipeline_mode<synchronous>, transform_indices = @transform_2, window_bounds = array<i64: 1, 32>}, {pipeline_mode = #tpu.pipeline_mode<synchronous>, transform_indices = @transform_3, window_bounds = array<i64: 1, 32, 32>}, {pipeline_mode = #tpu.pipeline_mode<synchronous>, transform_indices = @transform_4, window_bounds = array<i64: 1, 1, 32>}, {pipeline_mode = #tpu.pipeline_mode<synchronous>, transform_indices = @transform_5, window_bounds = array<i64: 32, 8>}, {pipeline_mode = #tpu.pipeline_mode<synchronous>, transform_indices = @transform_6, window_bounds = array<i64: 1, 8>}, {transform_indices = @transform_7, window_bounds = array<i64: 256, 8>}]} {
    %c0 = arith.constant 0 : index
    %c0_0 = arith.constant 0 : index
    %0 = vector.load %arg1[%c0, %c0_0] : memref<256x2xf32, #tpu.memory_space<vmem>>, vector<256x2xf32>
    %1 = vector.extract_strided_slice %0 {offsets = [0, 0], sizes = [256, 1], strides = [1, 1]} : vector<256x2xf32> to vector<256x1xf32>
    %c0_1 = arith.constant 0 : index
    %c0_2 = arith.constant 0 : index
    %2 = vector.load %arg2[%c0_1, %c0_2] : memref<2x32xf32, #tpu.memory_space<vmem>>, vector<1x32xf32>
    %3 = vector.broadcast %1 : vector<256x1xf32> to vector<256x32xf32>
    %4 = vector.broadcast %2 : vector<1x32xf32> to vector<256x32xf32>
    %5 = arith.mulf %3, %4 : vector<256x32xf32>
    %6 = vector.extract_strided_slice %0 {offsets = [0, 1], sizes = [256, 1], strides = [1, 1]} : vector<256x2xf32> to vector<256x1xf32>
    %c1 = arith.constant 1 : index
    %c0_3 = arith.constant 0 : index
    %7 = vector.load %arg2[%c1, %c0_3] : memref<2x32xf32, #tpu.memory_space<vmem>>, vector<1x32xf32>
    %8 = vector.broadcast %6 : vector<256x1xf32> to vector<256x32xf32>
    %9 = vector.broadcast %7 : vector<1x32xf32> to vector<256x32xf32>
    %10 = arith.mulf %8, %9 : vector<256x32xf32>
    %11 = arith.addf %5, %10 : vector<256x32xf32>
    %c0_4 = arith.constant 0 : index
    %c0_5 = arith.constant 0 : index
    %12 = vector.load %arg3[%c0_4, %c0_5] : memref<1x32xf32, #tpu.memory_space<vmem>>, vector<1x32xf32>
    %13 = vector.broadcast %12 : vector<1x32xf32> to vector<256x32xf32>
    %14 = arith.addf %11, %13 : vector<256x32xf32>
    %15 = math.absf %14 : vector<256x32xf32>
    %c0_i32 = arith.constant 0 : i32
    %16 = arith.truncf %15 : vector<256x32xf32> to vector<256x32xbf16>
    %17 = arith.index_cast %c0_i32 : i32 to index
    %c0_6 = arith.constant 0 : index
    %c0_7 = arith.constant 0 : index
    %18 = vector.load %arg4[%17, %c0_6, %c0_7] : memref<1x32x32xbf16, #tpu.memory_space<vmem>>, vector<1x32x32xbf16>
    %19 = vector.shape_cast %18 : vector<1x32x32xbf16> to vector<32x32xbf16>
    %cst = arith.constant dense<0.000000e+00> : vector<256x32xf32>
    %20 = tpu.matmul %16, %19, %cst {dimension_numbers = #tpu.dot_dimension_numbers<[1], [0], [0], [1], [0, 0, 1, 1], [], []>} : vector<256x32xbf16>, vector<32x32xbf16>, vector<256x32xf32> -> vector<256x32xf32>
    %21 = arith.index_cast %c0_i32 : i32 to index
    %c0_8 = arith.constant 0 : index
    %c0_9 = arith.constant 0 : index
    %22 = vector.load %arg5[%21, %c0_8, %c0_9] : memref<1x1x32xf32, #tpu.memory_space<vmem>>, vector<1x1x32xf32>
    %23 = vector.shape_cast %22 : vector<1x1x32xf32> to vector<1x32xf32>
    %24 = vector.broadcast %23 : vector<1x32xf32> to vector<256x32xf32>
    %25 = arith.addf %20, %24 : vector<256x32xf32>
    %26 = math.absf %25 : vector<256x32xf32>
    %c1_i32 = arith.constant 1 : i32
    %27 = arith.truncf %26 : vector<256x32xf32> to vector<256x32xbf16>
    %c0_10 = arith.constant 0 : index
    %c0_11 = arith.constant 0 : index
    %28 = vector.load %arg6[%c0_10, %c0_11] : memref<32x8xbf16, #tpu.memory_space<vmem>>, vector<32x8xbf16>
    %cst_12 = arith.constant dense<0.000000e+00> : vector<256x8xf32>
    %29 = tpu.matmul %27, %28, %cst_12 {dimension_numbers = #tpu.dot_dimension_numbers<[1], [0], [0], [1], [0, 0, 1, 1], [], []>} : vector<256x32xbf16>, vector<32x8xbf16>, vector<256x8xf32> -> vector<256x8xf32>
    %c0_13 = arith.constant 0 : index
    %c0_14 = arith.constant 0 : index
    %30 = vector.load %arg7[%c0_13, %c0_14] : memref<1x8xf32, #tpu.memory_space<vmem>>, vector<1x8xf32>
    %31 = vector.broadcast %30 : vector<1x8xf32> to vector<256x8xf32>
    %32 = arith.addf %29, %31 : vector<256x8xf32>
    %c0_15 = arith.constant 0 : index
    %c0_16 = arith.constant 0 : index
    %33 = vector.load %arg8[%c0_15, %c0_16] : memref<256x8xf32, #tpu.memory_space<vmem>>, vector<256x8xf32>
    tpu.vector_store %arg8[%c0_15, %c0_16], %32 {strides = array<i32>} : memref<256x8xf32, #tpu.memory_space<vmem>>, vector<256x8xf32>,
    return
  }
  func.func @transform_0(%arg0: i32) -> (i32, i32) {
    %c0_i32 = arith.constant 0 : i32
    %c0_i32_0 = arith.constant 0 : i32
    return %arg0, %c0_i32 : i32, i32
  }
  func.func @transform_1(%arg0: i32) -> (i32, i32) {
    %c0_i32 = arith.constant 0 : i32
    %c0_i32_0 = arith.constant 0 : i32
    %c0_i32_1 = arith.constant 0 : i32
    return %c0_i32, %c0_i32_0 : i32, i32
  }
  func.func @transform_2(%arg0: i32) -> (i32, i32) {
    %c0_i32 = arith.constant 0 : i32
    %c0_i32_0 = arith.constant 0 : i32
    %c0_i32_1 = arith.constant 0 : i32
    return %c0_i32, %c0_i32_0 : i32, i32
  }
  func.func @transform_3(%arg0: i32) -> (i32, i32, i32) {
    %c0_i32 = arith.constant 0 : i32
    %c0_i32_0 = arith.constant 0 : i32
    %c0_i32_1 = arith.constant 0 : i32
    %c0_i32_2 = arith.constant 0 : i32
    return %c0_i32, %c0_i32_0, %c0_i32_1 : i32, i32, i32
  }
  func.func @transform_4(%arg0: i32) -> (i32, i32, i32) {
    %c0_i32 = arith.constant 0 : i32
    %c0_i32_0 = arith.constant 0 : i32
    %c0_i32_1 = arith.constant 0 : i32
    %c0_i32_2 = arith.constant 0 : i32
    return %c0_i32, %c0_i32_0, %c0_i32_1 : i32, i32, i32
  }
  func.func @transform_5(%arg0: i32) -> (i32, i32) {
    %c0_i32 = arith.constant 0 : i32
    %c0_i32_0 = arith.constant 0 : i32
    %c0_i32_1 = arith.constant 0 : i32
    return %c0_i32, %c0_i32_0 : i32, i32
  }
  func.func @transform_6(%arg0: i32) -> (i32, i32) {
    %c0_i32 = arith.constant 0 : i32
    %c0_i32_0 = arith.constant 0 : i32
    %c0_i32_1 = arith.constant 0 : i32
    return %c0_i32, %c0_i32_0 : i32, i32
  }
  func.func @transform_7(%arg0: i32) -> (i32, i32) {
    %c0_i32 = arith.constant 0 : i32
    %c0_i32_0 = arith.constant 0 : i32
    return %arg0, %c0_i32 : i32, i32
  }
}

module attributes {stable_mosaic.version = 11 : i64} {
  func.func @_fcn_kernel(%arg0: i32, %arg1: memref<256x2xf32, #tpu.memory_space<vmem>>, %arg2: memref<2x32xf32, #tpu.memory_space<vmem>>, %arg3: memref<1x32xf32, #tpu.memory_space<vmem>>, %arg4: memref<1x32x32xbf16, #tpu.memory_space<vmem>>, %arg5: memref<1x1x32xf32, #tpu.memory_space<vmem>>, %arg6: memref<32x8xbf16, #tpu.memory_space<vmem>>, %arg7: memref<1x8xf32, #tpu.memory_space<vmem>>, %arg8: memref<256x8xf32, #tpu.memory_space<vmem>>) attributes {dimension_semantics = [#tpu.dimension_semantics<parallel>], iteration_bounds = array<i64: 2>, scalar_prefetch = 0 : i64, scratch_operands = 0 : i64, tpu.core_type = #tpu.core_type<tc>, window_params = [{transform_indices = @transform_0, window_bounds = array<i64: 256, 2>}, {pipeline_mode = #tpu.pipeline_mode<synchronous>, transform_indices = @transform_1, window_bounds = array<i64: 2, 32>}, {pipeline_mode = #tpu.pipeline_mode<synchronous>, transform_indices = @transform_2, window_bounds = array<i64: 1, 32>}, {pipeline_mode = #tpu.pipeline_mode<synchronous>, transform_indices = @transform_3, window_bounds = array<i64: 1, 32, 32>}, {pipeline_mode = #tpu.pipeline_mode<synchronous>, transform_indices = @transform_4, window_bounds = array<i64: 1, 1, 32>}, {pipeline_mode = #tpu.pipeline_mode<synchronous>, transform_indices = @transform_5, window_bounds = array<i64: 32, 8>}, {pipeline_mode = #tpu.pipeline_mode<synchronous>, transform_indices = @transform_6, window_bounds = array<i64: 1, 8>}, {transform_indices = @transform_7, window_bounds = array<i64: 256, 8>}]} {
    %c0 = arith.constant 0 : index
    %c0_0 = arith.constant 0 : index
    %0 = vector.load %arg1[%c0, %c0_0] : memref<256x2xf32, #tpu.memory_space<vmem>>, vector<256x2xf32>
    %1 = vector.extract_strided_slice %0 {offsets = [0, 0], sizes = [256, 1], strides = [1, 1]} : vector<256x2xf32> to vector<256x1xf32>
    %c0_1 = arith.constant 0 : index
    %c0_2 = arith.constant 0 : index
    %2 = vector.load %arg2[%c0_1, %c0_2] : memref<2x32xf32, #tpu.memory_space<vmem>>, vector<1x32xf32>
    %3 = vector.broadcast %1 : vector<256x1xf32> to vector<256x32xf32>
    %4 = vector.broadcast %2 : vector<1x32xf32> to vector<256x32xf32>
    %5 = arith.mulf %3, %4 : vector<256x32xf32>
    %6 = vector.extract_strided_slice %0 {offsets = [0, 1], sizes = [256, 1], strides = [1, 1]} : vector<256x2xf32> to vector<256x1xf32>
    %c1 = arith.constant 1 : index
    %c0_3 = arith.constant 0 : index
    %7 = vector.load %arg2[%c1, %c0_3] : memref<2x32xf32, #tpu.memory_space<vmem>>, vector<1x32xf32>
    %8 = vector.broadcast %6 : vector<256x1xf32> to vector<256x32xf32>
    %9 = vector.broadcast %7 : vector<1x32xf32> to vector<256x32xf32>
    %10 = arith.mulf %8, %9 : vector<256x32xf32>
    %11 = arith.addf %5, %10 : vector<256x32xf32>
    %c0_4 = arith.constant 0 : index
    %c0_5 = arith.constant 0 : index
    %12 = vector.load %arg3[%c0_4, %c0_5] : memref<1x32xf32, #tpu.memory_space<vmem>>, vector<1x32xf32>
    %13 = vector.broadcast %12 : vector<1x32xf32> to vector<256x32xf32>
    %14 = arith.addf %11, %13 : vector<256x32xf32>
    %15 = math.absf %14 : vector<256x32xf32>
    %c0_i32 = arith.constant 0 : i32
    %16 = arith.truncf %15 : vector<256x32xf32> to vector<256x32xbf16>
    %17 = arith.index_cast %c0_i32 : i32 to index
    %c0_6 = arith.constant 0 : index
    %c0_7 = arith.constant 0 : index
    %18 = vector.load %arg4[%17, %c0_6, %c0_7] : memref<1x32x32xbf16, #tpu.memory_space<vmem>>, vector<1x32x32xbf16>
    %19 = vector.shape_cast %18 : vector<1x32x32xbf16> to vector<32x32xbf16>
    %cst = arith.constant dense<0.000000e+00> : vector<256x32xf32>
    %20 = tpu.matmul %16, %19, %cst {dimension_numbers = #tpu.dot_dimension_numbers<[1], [0], [0], [1], [0, 0, 1, 1], [], []>} : vector<256x32xbf16>, vector<32x32xbf16>, vector<256x32xf32> -> vector<256x32xf32>
    %21 = arith.index_cast %c0_i32 : i32 to index
    %c0_8 = arith.constant 0 : index
    %c0_9 = arith.constant 0 : index
    %22 = vector.load %arg5[%21, %c0_8, %c0_9] : memref<1x1x32xf32, #tpu.memory_space<vmem>>, vector<1x1x32xf32>
    %23 = vector.shape_cast %22 : vector<1x1x32xf32> to vector<1x32xf32>
    %24 = vector.broadcast %23 : vector<1x32xf32> to vector<256x32xf32>
    %25 = arith.addf %20, %24 : vector<256x32xf32>
    %26 = math.absf %25 : vector<256x32xf32>
    %c1_i32 = arith.constant 1 : i32
    %27 = arith.truncf %26 : vector<256x32xf32> to vector<256x32xbf16>
    %c0_10 = arith.constant 0 : index
    %c0_11 = arith.constant 0 : index
    %28 = vector.load %arg6[%c0_10, %c0_11] : memref<32x8xbf16, #tpu.memory_space<vmem>>, vector<32x8xbf16>
    %cst_12 = arith.constant dense<0.000000e+00> : vector<256x8xf32>
    %29 = tpu.matmul %27, %28, %cst_12 {dimension_numbers = #tpu.dot_dimension_numbers<[1], [0], [0], [1], [0, 0, 1, 1], [], []>} : vector<256x32xbf16>, vector<32x8xbf16>, vector<256x8xf32> -> vector<256x8xf32>
    %c0_13 = arith.constant 0 : index
    %c0_14 = arith.constant 0 : index
    %30 = vector.load %arg7[%c0_13, %c0_14] : memref<1x8xf32, #tpu.memory_space<vmem>>, vector<1x8xf32>
    %31 = vector.broadcast %30 : vector<1x8xf32> to vector<256x8xf32>
    %32 = arith.addf %29, %31 : vector<256x8xf32>
    %c0_15 = arith.constant 0 : index
    %c0_16 = arith.constant 0 : index
    %33 = vector.load %arg8[%c0_15, %c0_16] : memref<256x8xf32, #tpu.memory_space<vmem>>, vector<256x8xf32>
    tpu.vector_store %arg8[%c0_15, %c0_16], %32 {strides = array<i32>} : memref<256x8xf32, #tpu.memory_space<vmem>>, vector<256x8xf32>,
    return
  }
  func.func @transform_0(%arg0: i32) -> (i32, i32) {
    %c0_i32 = arith.constant 0 : i32
    %c0_i32_0 = arith.constant 0 : i32
    return %arg0, %c0_i32 : i32, i32
  }
  func.func @transform_1(%arg0: i32) -> (i32, i32) {
    %c0_i32 = arith.constant 0 : i32
    %c0_i32_0 = arith.constant 0 : i32
    %c0_i32_1 = arith.constant 0 : i32
    return %c0_i32, %c0_i32_0 : i32, i32
  }
  func.func @transform_2(%arg0: i32) -> (i32, i32) {
    %c0_i32 = arith.constant 0 : i32
    %c0_i32_0 = arith.constant 0 : i32
    %c0_i32_1 = arith.constant 0 : i32
    return %c0_i32, %c0_i32_0 : i32, i32
  }
  func.func @transform_3(%arg0: i32) -> (i32, i32, i32) {
    %c0_i32 = arith.constant 0 : i32
    %c0_i32_0 = arith.constant 0 : i32
    %c0_i32_1 = arith.constant 0 : i32
    %c0_i32_2 = arith.constant 0 : i32
    return %c0_i32, %c0_i32_0, %c0_i32_1 : i32, i32, i32
  }
  func.func @transform_4(%arg0: i32) -> (i32, i32, i32) {
    %c0_i32 = arith.constant 0 : i32
    %c0_i32_0 = arith.constant 0 : i32
    %c0_i32_1 = arith.constant 0 : i32
    %c0_i32_2 = arith.constant 0 : i32
    return %c0_i32, %c0_i32_0, %c0_i32_1 : i32, i32, i32
  }
  func.func @transform_5(%arg0: i32) -> (i32, i32) {
    %c0_i32 = arith.constant 0 : i32
    %c0_i32_0 = arith.constant 0 : i32
    %c0_i32_1 = arith.constant 0 : i32
    return %c0_i32, %c0_i32_0 : i32, i32
  }
  func.func @transform_6(%arg0: i32) -> (i32, i32) {
    %c0_i32 = arith.constant 0 : i32
    %c0_i32_0 = arith.constant 0 : i32
    %c0_i32_1 = arith.constant 0 : i32
    return %c0_i32, %c0_i32_0 : i32, i32
  }
  func.func @transform_7(%arg0: i32) -> (i32, i32) {
    %c0_i32 = arith.constant 0 : i32
    %c0_i32_0 = arith.constant 0 : i32
    return %arg0, %c0_i32 : i32, i32
  }
}

</mosaic_0001>

<bundles_post_ra>
// kernel: new_fcn_forward.1
= control target key start
LH: loop header
LB: loop body
LE: loop exit
PB: predicated region body
PF: predicated region fallthrough
CT: control target
= control target key end

     0   :  { %s1656_s24 = smov 0   ;;  %s2065_s0 = inlined_call_operand.vmem [shape: f32[512,2], index: 0, kind: input, shape index: {}]   ;;  %s2066_s1 = inlined_call_operand.vmem [shape: f32[2,32], index: 1, kind: input, shape index: {}]   ;;  %s2067_s2 = inlined_call_operand.vmem [shape: f32[1,32], index: 2, kind: input, shape index: {}]   ;;  %s2068_s3 = inlined_call_operand.vmem [shape: bf16[1,32,32], index: 3, kind: input, shape index: {}]   ;;  %s2069_s4 = inlined_call_operand.vmem [shape: f32[1,1,32], index: 4, kind: input, shape index: {}]   ;;  %s2070_s5 = inlined_call_operand.vmem [shape: bf16[32,8], index: 5, kind: input, shape index: {}]   ;;  %s2071_s6 = inlined_call_operand.vmem [shape: f32[1,8], index: 6, kind: input, shape index: {}]   ;;  %s2072_s7 = inlined_call_operand.vmem [shape: f32[512,8], index: 7, kind: output, shape index: {}]  }
   0x1 LB: > { %s1398_s25 = sadd.s32 4294967295, %s1612_s24   ;;  %p1402_p0 = scmp.ge.s32.totalorder %s1612_s24, 1  ;;  %s1612_s24 = sphi %s1656_s24, %s17_s24  }
   0x2   : > { %p238_p1 = scmp.lt.s32.totalorder %s1612_s24, 3 }
   0x4   : > { %p239_p2 = pnand %p1402_p0, %p238_p1 }
   0x5   : > { %s1403_s26 = sshll.u32 (!%p239_p2), %s1398_s25, 5  ;;  %v1614_v0 = vmov (!%p239_p2), 1   ;;  %v1615_v7 = vmov (!%p239_p2), 0   ;;  %v1602_v15 = vld [vmem:[%s2068_s3] sm:$0xff] (!%p239_p2)   ;;  %v1603_v17 = vld [vmem:[%s2068_s3 + $0x8] sm:$0xff] (!%p239_p2)   ;;  %vm819_vm0 = vcmask (!%p239_p2), 261120  }
   0x6   : > { %242 = sbr.rel (%p239_p2) target bundleno = 777 (0x309), region = 48  ;;  %1570 = vset.pattern.permute.xlu0 (!%p239_p2), %v1614_v0  ;;  %1568 = vset.pattern.permute.xlu1 (!%p239_p2), %v1614_v0  ;;  %p271_p3 = scmp.lt.s32.totalorder (!%p239_p2), %s1403_s26, 63  ;;  %v1757_v47 = vld [vmem:[%s2066_s1 + $0x1] ss:$0 sm:$0xff] (!%p239_p2)  ;;  %v1762_v49 = vld [vmem:[%s2066_s1] ss:$0 sm:$0xff] (!%p239_p2) }
   0x7   : > { %1486 = vmatprep.subr.bf16.mxu0 (!%p239_p2), %v1602_v15  ;;  %v1775_v61 = vld [vmem:[%s2067_s2] ss:$0 sm:$0xff] (!%p239_p2)  ;;  %vm1309_vm1 = vcmask (!%p239_p2), 64512  }
   0x8   : > { %1487 = vmatpush3.bf16.msra.mxu0 (!%p239_p2), %v1602_v15 }
   0x9   : > { %1488 = vmatprep.subr.bf16.mxu0 (!%p239_p2), %v1603_v17 }
   0xc   : > { %1489 = vmatpush3.bf16.msra.mxu0 (!%p239_p2), %v1603_v17 }
   0xd   : > { %s2074_s26 = smov (!%p271_p3, %s1403_s26), 63 }
   0xe   : > { %s1404_s27 = sshll.u32 %s2074_s26, 3 }
   0xf   : > { %s1674_s30 = scalar_lea.vmem %s2065_s0, %s1404_s27  ;;  %s1964_s8 = scalar_lea.vmem %s2072_s7, %s1404_s27 }
  0x10   : > { %v285_v1 = vld [vmem:[%s1674_s30 + $0x10] sm:$0xff]  ;;  %v283_v2 = vld [vmem:[%s1674_s30] sm:$0xff]  ;;  %v284_v4 = vld [vmem:[%s1674_s30 + $0x8] sm:$0xff] }
  0x11   : > { %522 = vperm.xlu0 %1570, %v285_v1   ;;  %514 = vperm.xlu1 %1568, %v283_v2   ;;  %v289_v3 = vld [vmem:[%s1674_s30 + $0x30] sm:$0xff]  ;;  %v286_v6 = vld [vmem:[%s1674_s30 + $0x18] sm:$0xff]  ;;  %v287_v10 = vld [vmem:[%s1674_s30 + $0x20] sm:$0xff] }
  0x12   : > { %v293_v5 = vld [vmem:[%s1674_s30 + $0x50] sm:$0xff]  ;;  %v288_v13 = vld [vmem:[%s1674_s30 + $0x28] sm:$0xff]  ;;  %v290_v14 = vld [vmem:[%s1674_s30 + $0x38] sm:$0xff] }
  0x13   : > { %v297_v8 = vld [vmem:[%s1674_s30 + $0x70] sm:$0xff]  ;;  %v291_v16 = vld [vmem:[%s1674_s30 + $0x40] sm:$0xff]  ;;  %v292_v18 = vld [vmem:[%s1674_s30 + $0x48] sm:$0xff] }
  0x14   : > { %v301_v9 = vld [vmem:[%s1674_s30 + $0x90] sm:$0xff]  ;;  %v296_v19 = vld [vmem:[%s1674_s30 + $0x68] sm:$0xff]  ;;  %v294_v20 = vld [vmem:[%s1674_s30 + $0x58] sm:$0xff] }
  0x15   : > { %538 = vperm.xlu0 %1570, %v289_v3   ;;  %518 = vperm.xlu1 %1568, %v284_v4   ;;  %v305_v11 = vld [vmem:[%s1674_s30 + $0xb0] sm:$0xff]  ;;  %v300_v21 = vld [vmem:[%s1674_s30 + $0x88] sm:$0xff]  ;;  %v295_v22 = vld [vmem:[%s1674_s30 + $0x60] sm:$0xff] }
  0x16   : > { %v309_v12 = vld [vmem:[%s1674_s30 + $0xd0] sm:$0xff]  ;;  %v304_v23 = vld [vmem:[%s1674_s30 + $0xa8] sm:$0xff]  ;;  %v298_v25 = vld [vmem:[%s1674_s30 + $0x78] sm:$0xff] }
  0x17   : > { %v308_v24 = vld [vmem:[%s1674_s30 + $0xc8] sm:$0xff]  ;;  %v299_v27 = vld [vmem:[%s1674_s30 + $0x80] sm:$0xff]  ;;  %v313_v28 = vld [vmem:[%s1674_s30 + $0xf0] sm:$0xff] }
  0x18   : > { %v1720_v26 = vld [vmem:[%s1674_s30 + $0xe8] sm:$0xff]  ;;  %v302_v29 = vld [vmem:[%s1674_s30 + $0x98] sm:$0xff]  ;;  %v303_v30 = vld [vmem:[%s1674_s30 + $0xa0] sm:$0xff] }
  0x19   : > { %554 = vperm.xlu0 %1570, %v293_v5   ;;  %1569 = vset.pattern.permute.xlu1 %v1615_v7  ;;  %v306_v31 = vld [vmem:[%s1674_s30 + $0xb8] sm:$0xff]  ;;  %v307_v38 = vld [vmem:[%s1674_s30 + $0xc0] sm:$0xff] }
  0x1a   : > { %333 = vperm.xlu1 %1569, %v286_v6   ;;  %v310_v44 = vld [vmem:[%s1674_s30 + $0xd8] sm:$0xff]  ;;  %v311_v58 = vld [vmem:[%s1674_s30 + $0xe0] sm:$0xff] }
  0x1d   : > { %570 = vperm.xlu0 %1570, %v297_v8  }
  0x1e   : > { %1571 = vset.pattern.permute.xlu1 %v1614_v0 }
  0x1f   : > { %526 = vperm.xlu1 %1571, %v286_v6  }
  0x21   : > { %586 = vperm.xlu0 %1570, %v301_v9  }
  0x23   : > { %1572 = vset.pattern.permute.xlu1 %v1615_v7 }
  0x24   : > { %338 = vperm.xlu1 %1572, %v287_v10  }
  0x25   : > { %602 = vperm.xlu0 %1570, %v305_v11  }
  0x28   : > { %1573 = vset.pattern.permute.xlu1 %v1614_v0 }
  0x29   : > { %618 = vperm.xlu0 %1570, %v309_v12   ;;  %530 = vperm.xlu1 %1573, %v287_v10  }
  0x2d   : > { %1595 = vset.pattern.permute.xlu0 %v1615_v7  ;;  %534 = vperm.xlu1 %1573, %v288_v13  }
  0x2e   : > { %318 = vperm.xlu0 %1595, %v283_v2  }
  0x31   : > { %1574 = vset.pattern.permute.xlu1 %v1615_v7 }
  0x32   : > { %323 = vperm.xlu0 %1595, %v284_v4   ;;  %353 = vperm.xlu1 %1574, %v290_v14  }
  0x36   : > { %328 = vperm.xlu0 %1595, %v285_v1   ;;  %1575 = vset.pattern.permute.xlu1 %v1614_v0 }
  0x37   : > { %542 = vperm.xlu1 %1575, %v290_v14  }
  0x3a   : > { %343 = vperm.xlu0 %1595, %v288_v13  }
  0x3b   : > { %1576 = vset.pattern.permute.xlu1 %v1615_v7 }
  0x3c   : > { %358 = vperm.xlu1 %1576, %v291_v16  }
  0x3e   : > { %348 = vperm.xlu0 %1595, %v289_v3  }
  0x40   : > { %1577 = vset.pattern.permute.xlu1 %v1614_v0 }
  0x41   : > { %546 = vperm.xlu1 %1577, %v291_v16  }
  0x42   : > { %363 = vperm.xlu0 %1595, %v292_v18  }
  0x45   : > { %550 = vperm.xlu1 %1577, %v292_v18  }
  0x46   : > { %368 = vperm.xlu0 %1595, %v293_v5  }
  0x49   : > { %1578 = vset.pattern.permute.xlu1 %v1615_v7 }
  0x4a   : > { %383 = vperm.xlu0 %1595, %v296_v19   ;;  %373 = vperm.xlu1 %1578, %v294_v20  }
  0x4e   : > { %388 = vperm.xlu0 %1595, %v297_v8   ;;  %1579 = vset.pattern.permute.xlu1 %v1614_v0 }
  0x4f   : > { %558 = vperm.xlu1 %1579, %v294_v20  }
  0x52   : > { %403 = vperm.xlu0 %1595, %v300_v21  }
  0x53   : > { %1580 = vset.pattern.permute.xlu1 %v1615_v7 }
  0x54   : > { %378 = vperm.xlu1 %1580, %v295_v22  }
  0x56   : > { %408 = vperm.xlu0 %1595, %v301_v9  }
  0x58   : > { %1581 = vset.pattern.permute.xlu1 %v1614_v0 }
  0x59   : > { %562 = vperm.xlu1 %1581, %v295_v22  }
  0x5a   : > { %423 = vperm.xlu0 %1595, %v304_v23  }
  0x5d   : > { %566 = vperm.xlu1 %1581, %v296_v19  }
  0x5e   : > { %428 = vperm.xlu0 %1595, %v305_v11  }
  0x61   : > { %1582 = vset.pattern.permute.xlu1 %v1615_v7 }
  0x62   : > { %443 = vperm.xlu0 %1595, %v308_v24   ;;  %393 = vperm.xlu1 %1582, %v298_v25  }
  0x66   : > { %448 = vperm.xlu0 %1595, %v309_v12   ;;  %1583 = vset.pattern.permute.xlu1 %v1614_v0 }
  0x67   : > { %574 = vperm.xlu1 %1583, %v298_v25  }
  0x6a   : > { %463 = vperm.xlu0 %1595, %v1720_v26  }
  0x6b   : > { %1584 = vset.pattern.permute.xlu1 %v1615_v7 }
  0x6c   : > { %398 = vperm.xlu1 %1584, %v299_v27  }
  0x6e   : > { %468 = vperm.xlu0 %1595, %v313_v28  }
  0x70   : > { %1585 = vset.pattern.permute.xlu1 %v1614_v0 }
  0x71   : > { %578 = vperm.xlu1 %1585, %v299_v27  }
  0x72   : > { %1600 = vset.pattern.permute.xlu0 %v1614_v0 }
  0x73   : > { %634 = vperm.xlu0 %1600, %v313_v28  }
  0x75   : > { %582 = vperm.xlu1 %1585, %v300_v21  }
  0x79   : > { %1586 = vset.pattern.permute.xlu1 %v1615_v7 }
  0x7a   : > { %413 = vperm.xlu1 %1586, %v302_v29  }
  0x7e   : > { %1587 = vset.pattern.permute.xlu1 %v1614_v0 }
  0x7f   : > { %590 = vperm.xlu1 %1587, %v302_v29  }
  0x83   : > { %1588 = vset.pattern.permute.xlu1 %v1615_v7 }
  0x84   : > { %418 = vperm.xlu1 %1588, %v303_v30  }
  0x88   : > { %1589 = vset.pattern.permute.xlu1 %v1614_v0 }
  0x89   : > { %594 = vperm.xlu1 %1589, %v303_v30  }
  0x8d   : > { %598 = vperm.xlu1 %1589, %v304_v23  }
  0x90   : > { %v515_v32 = vpop.permute.xlu1 %514  ;;  %v523_v33 = vpop.permute.xlu0 %522 }
  0x91   : > { %1590 = vset.pattern.permute.xlu1 %v1615_v7  ;;  %v645_v51 = vmul.f32 %v1757_v47, %v515_v32  ;;  %v647_v1 = vmul.f32 %v1757_v47, %v523_v33 }
  0x92   : > { %433 = vperm.xlu1 %1590, %v306_v31  }
  0x94   : > { %v519_v34 = vpop.permute.xlu1 %518  ;;  %v1736_v35 = vpop.permute.xlu0 %538 }
  0x95   : > { %v646_v59 = vmul.f32 %v1757_v47, %v519_v34  ;;  %v651_v22 = vmul.f32 %v1757_v47, %v1736_v35  ;;  %v314_v34 = vld [vmem:[%s1674_s30 + $0xf8] sm:$0xff] }
  0x96   : > { %1591 = vset.pattern.permute.xlu1 %v1614_v0 }
  0x97   : > { %606 = vperm.xlu1 %1591, %v306_v31  }
  0x98   : > { %v1739_v36 = vpop.permute.xlu0 %554 }
  0x99   : > { %v334_v37 = vpop.permute.xlu1 %333 }
  0x9a   : > { %v483_v55 = vmul.f32 %v1762_v49, %v334_v37 }
  0x9b   : > { %1592 = vset.pattern.permute.xlu1 %v1615_v7 }
  0x9c   : > { %438 = vperm.xlu1 %1592, %v307_v38   ;;  %v1743_v39 = vpop.permute.xlu0 %570 }
  0x9e   : > { %v527_v40 = vpop.permute.xlu1 %526 }
  0x9f   : > { %v648_v53 = vmul.f32 %v1757_v47, %v527_v40 }
  0xa0   : > { %1593 = vset.pattern.permute.xlu1 %v1614_v0  ;;  %v1746_v41 = vpop.permute.xlu0 %586 }
  0xa1   : > { %610 = vperm.xlu1 %1593, %v307_v38   ;;  %v680_v62 = vadd.f32 %v648_v53, %v483_v55 }
  0xa3   : > { %v339_v42 = vpop.permute.xlu1 %338  ;;  %v719_v10 = vadd.f32 %v1775_v61, %v680_v62 }
  0xa4   : > { %v1748_v43 = vpop.permute.xlu0 %602  ;;  %v484_v4 = vmul.f32 %v1762_v49, %v339_v42 }
  0xa5   : > { %614 = vperm.xlu1 %1593, %v308_v24   ;;  %v751_v23 = vand.u32 2147483647, %v719_v10 }
  0xa8   : > { %v531_v45 = vpop.permute.xlu1 %530  ;;  %v1751_v46 = vpop.permute.xlu0 %618 }
  0xa9   : > { %1594 = vset.pattern.permute.xlu1 %v1615_v7  ;;  %v649_v63 = vmul.f32 %v1757_v47, %v531_v45 }
  0xaa   : > { %453 = vperm.xlu1 %1594, %v310_v44  }
  0xab   : > { %v681_v11 = vadd.f32 %v649_v63, %v484_v4 }
  0xac   : > { %v535_v48 = vpop.permute.xlu1 %534 }
  0xad   : > { %v319_v50 = vpop.permute.xlu0 %318  ;;  %v650_v16 = vmul.f32 %v1757_v47, %v535_v48  ;;  %v720_v25 = vadd.f32 %v1775_v61, %v681_v11 }
  0xae   : > { %v480_v52 = vmul.f32 %v1762_v49, %v319_v50  ;;  %1596 = vset.pattern.permute.xlu1 %v1614_v0 }
  0xaf   : > { %622 = vperm.xlu1 %1596, %v310_v44   ;;  %v752_v37 = vand.u32 2147483647, %v720_v25 }
  0xb0   : > { %v677_v54 = vadd.f32 %v645_v51, %v480_v52 }
  0xb1   : > { %v324_v56 = vpop.permute.xlu0 %323  ;;  %v354_v57 = vpop.permute.xlu1 %353 }
  0xb2   : > { %v481_v60 = vmul.f32 %v1762_v49, %v324_v56  ;;  %v716_v3 = vadd.f32 %v1775_v61, %v677_v54  ;;  %v487_v18 = vmul.f32 %v1762_v49, %v354_v57 }
  0xb3   : > { %1597 = vset.pattern.permute.xlu1 %v1615_v7 }
  0xb4   : > { %v678_v2 = vadd.f32 %v646_v59, %v481_v60  ;;  %458 = vperm.xlu1 %1597, %v311_v58   ;;  %v748_v14 = vand.u32 2147483647, %v716_v3 }
  0xb5   : > { %v329_v5 = vpop.permute.xlu0 %328 }
  0xb6   : > { %v482_v6 = vmul.f32 %v1762_v49, %v329_v5  ;;  %v543_v8 = vpop.permute.xlu1 %542  ;;  %v717_v9 = vadd.f32 %v1775_v61, %v678_v2 }
  0xb7   : > { %v652_v13 = vmul.f32 %v1757_v47, %v543_v8 }
  0xb8   : > { %v679_v12 = vadd.f32 %v647_v1, %v482_v6  ;;  %1598 = vset.pattern.permute.xlu1 %v1614_v0  ;;  %v749_v15 = vand.u32 2147483647, %v717_v9 }
  0xb9   : > { %v344_v17 = vpop.permute.xlu0 %343  ;;  %626 = vperm.xlu1 %1598, %v311_v58   ;;  %v684_v28 = vadd.f32 %v652_v13, %v487_v18 }
  0xba   : > { %v718_v19 = vadd.f32 %v1775_v61, %v679_v12  ;;  %v485_v20 = vmul.f32 %v1762_v49, %v344_v17  ;;  %v780_v21 = vpack.c.bf16 %v749_v15, %v748_v14 }
  0xbb   : > { %v359_v24 = vpop.permute.xlu1 %358  ;;  %v723_v35 = vadd.f32 %v1775_v61, %v684_v28 }
  0xbc   : > { %v750_v27 = vand.u32 2147483647, %v718_v19  ;;  %v682_v29 = vadd.f32 %v650_v16, %v485_v20  ;;  %1490 = vmatprep.mubr.msk.bf16.mxu0 %vm819_vm0, %v780_v21  ;;  %v488_v44 = vmul.f32 %v1762_v49, %v359_v24 }
  0xbd   : > { %v349_v30 = vpop.permute.xlu0 %348  ;;  %630 = vperm.xlu1 %1598, %v1720_v26   ;;  %v755_v53 = vand.u32 2147483647, %v723_v35 }
  0xbe   : > { %v781_v31 = vpack.c.bf16 %v751_v23, %v750_v27  ;;  %v721_v32 = vadd.f32 %v1775_v61, %v682_v29  ;;  %v486_v33 = vmul.f32 %v1762_v49, %v349_v30  ;;  %v659_v27 = vmul.f32 %v1757_v47, %v1743_v39 }
  0xc0   : > { %v753_v38 = vand.u32 2147483647, %v721_v32  ;;  %v683_v40 = vadd.f32 %v651_v22, %v486_v33  ;;  %1491 = vmatmul.mubr.msk.bf16.vlgmr.msra.gmra.mrb[0].mxu0 %vm819_vm0, %v781_v31  ;;  %v547_v42 = vpop.permute.xlu1 %546 }
  0xc1   : > { %v653_v45 = vmul.f32 %v1757_v47, %v547_v42  ;;  %v364_v48 = vpop.permute.xlu0 %363  ;;  %1599 = vset.pattern.permute.xlu1 %v1615_v7  ;;  %v655_v7 = vmul.f32 %v1757_v47, %v1739_v36 }
  0xc2   : > { %v782_v26 = vpack.c.bf16 %v753_v38, %v752_v37  ;;  %v722_v50 = vadd.f32 %v1775_v61, %v683_v40  ;;  %473 = vperm.xlu1 %1599, %v314_v34   ;;  %v489_v52 = vmul.f32 %v1762_v49, %v364_v48 }
  0xc3   : > { %v685_v51 = vadd.f32 %v653_v45, %v488_v44 }
  0xc4   : > { %v754_v54 = vand.u32 2147483647, %v722_v50  ;;  %1494 = vmatprep.mubr.msk.bf16.mxu0 %vm819_vm0, %v782_v26  ;;  %v551_v55 = vpop.permute.xlu1 %550 }
  0xc5   : > { %v654_v56 = vmul.f32 %v1757_v47, %v551_v55  ;;  %v369_v58 = vpop.permute.xlu0 %368  ;;  %v724_v59 = vadd.f32 %v1775_v61, %v685_v51 }
  0xc6   : > { %v783_v57 = vpack.c.bf16 %v755_v53, %v754_v54  ;;  %1601 = vset.pattern.permute.xlu1 %v1614_v0  ;;  %v490_v62 = vmul.f32 %v1762_v49, %v369_v58 }
  0xc7   : > { %v686_v60 = vadd.f32 %v654_v56, %v489_v52  ;;  %638 = vperm.xlu1 %1601, %v314_v34   ;;  %v756_v2 = vand.u32 2147483647, %v724_v59 }
  0xc8   : > { %1495 = vmatmul.mubr.msk.bf16.gmra.mrb[4].mxu0 %vm819_vm0, %v783_v57  ;;  %v687_v4 = vadd.f32 %v655_v7, %v490_v62 }
  0xc9   : > { %v725_v63 = vadd.f32 %v1775_v61, %v686_v60  ;;  %v374_v1 = vpop.permute.xlu1 %373  ;;  %v384_v18 = vpop.permute.xlu0 %383  ;;  %v663_v60 = vmul.f32 %v1757_v47, %v1746_v41 }
  0xca   : > { %v726_v0 = vadd.f32 %v1775_v61, %v687_v4  ;;  %v491_v36 = vmul.f32 %v1762_v49, %v374_v1  ;;  %v493_v19 = vmul.f32 %v1762_v49, %v384_v18 }
  0xcb   : > { %v757_v3 = vand.u32 2147483647, %v725_v63 }
  0xcc   : > { %v758_v10 = vand.u32 2147483647, %v726_v0 }
  0xcd   : > { %v784_v5 = vpack.c.bf16 %v757_v3, %v756_v2  ;;  %v389_v25 = vpop.permute.xlu0 %388 }
  0xce   : > { %v559_v6 = vpop.permute.xlu1 %558  ;;  %v494_v28 = vmul.f32 %v1762_v49, %v389_v25  ;;  %v667_v25 = vmul.f32 %v1757_v47, %v1748_v43  ;;  %v1605_v43 = vld [vmem:[%s2070_s5 + $0x8] sm:$0xff]  }
  0xcf   : > { %v656_v8 = vmul.f32 %v1757_v47, %v559_v6  ;;  %1498 = vmatprep.mubr.msk.bf16.mxu0 %vm819_vm0, %v784_v5 }
  0xd0   : > { %v691_v33 = vadd.f32 %v659_v27, %v494_v28 }
  0xd1   : > { %v688_v9 = vadd.f32 %v656_v8, %v491_v36  ;;  %v404_v53 = vpop.permute.xlu0 %403 }
  0xd2   : > { %v730_v40 = vadd.f32 %v1775_v61, %v691_v33  ;;  %v497_v54 = vmul.f32 %v1762_v49, %v404_v53 }
  0xd3   : > { %v727_v11 = vadd.f32 %v1775_v61, %v688_v9  ;;  %v379_v12 = vpop.permute.xlu1 %378 }
  0xd4   : > { %v492_v16 = vmul.f32 %v1762_v49, %v379_v12  ;;  %v762_v45 = vand.u32 2147483647, %v730_v40 }
  0xd5   : > { %v759_v13 = vand.u32 2147483647, %v727_v11  ;;  %v409_v59 = vpop.permute.xlu0 %408 }
  0xd6   : > { %v498_v62 = vmul.f32 %v1762_v49, %v409_v59 }
  0xd7   : > { %v785_v14 = vpack.c.bf16 %v759_v13, %v758_v10 }
  0xd8   : > { %v563_v15 = vpop.permute.xlu1 %562  ;;  %v695_v4 = vadd.f32 %v663_v60, %v498_v62  ;;  %v671_v60 = vmul.f32 %v1757_v47, %v1751_v46 }
  0xd9   : > { %v657_v17 = vmul.f32 %v1757_v47, %v563_v15  ;;  %1499 = vmatmul.mubr.msk.bf16.gmra.mrb[8].mxu0 %vm819_vm0, %v785_v14 }
  0xda   : > { %v734_v8 = vadd.f32 %v1775_v61, %v695_v4 }
  0xdb   : > { %v689_v20 = vadd.f32 %v657_v17, %v492_v16  ;;  %v424_v17 = vpop.permute.xlu0 %423 }
  0xdc   : > { %v567_v21 = vpop.permute.xlu1 %566  ;;  %v766_v11 = vand.u32 2147483647, %v734_v8 }
  0xdd   : > { %v658_v22 = vmul.f32 %v1757_v47, %v567_v21  ;;  %v728_v23 = vadd.f32 %v1775_v61, %v689_v20  ;;  %v501_v20 = vmul.f32 %v1762_v49, %v424_v17 }
  0xdf   : > { %v690_v24 = vadd.f32 %v658_v22, %v493_v19  ;;  %v760_v31 = vand.u32 2147483647, %v728_v23 }
  0xe1   : > { %v729_v29 = vadd.f32 %v1775_v61, %v690_v24  ;;  %v394_v30 = vpop.permute.xlu1 %393  ;;  %v429_v24 = vpop.permute.xlu0 %428 }
  0xe2   : > { %v495_v35 = vmul.f32 %v1762_v49, %v394_v30  ;;  %v502_v27 = vmul.f32 %v1762_v49, %v429_v24 }
  0xe3   : > { %v761_v32 = vand.u32 2147483647, %v729_v29 }
  0xe4   : > { %v699_v33 = vadd.f32 %v667_v25, %v502_v27 }
  0xe5   : > { %v786_v34 = vpack.c.bf16 %v761_v32, %v760_v31  ;;  %v1604_v32 = vld [vmem:[%s2070_s5] sm:$0xff]  }
  0xe6   : > { %v575_v37 = vpop.permute.xlu1 %574  ;;  %1522 = vmatprep.subr.bf16.mxu1 %v1604_v32  ;;  %v738_v40 = vadd.f32 %v1775_v61, %v699_v33 }
  0xe7   : > { %v660_v38 = vmul.f32 %v1757_v47, %v575_v37  ;;  %1502 = vmatprep.mubr.msk.bf16.mxu0 %vm819_vm0, %v786_v34  ;;  %1523 = vmatpush3.bf16.msra.mxu1 %v1604_v32 }
  0xe8   : > { %1524 = vmatprep.subr.bf16.mxu1 %v1605_v43 }
  0xe9   : > { %v692_v42 = vadd.f32 %v660_v38, %v495_v35 }
  0xeb   : > { %v731_v39 = vadd.f32 %v1775_v61, %v692_v42  ;;  %v399_v44 = vpop.permute.xlu1 %398  ;;  %1525 = vmatpush3.bf16.msra.mxu1 %v1605_v43 }
  0xec   : > { %v496_v51 = vmul.f32 %v1762_v49, %v399_v44 }
  0xed   : > { %v763_v48 = vand.u32 2147483647, %v731_v39 }
  0xef   : > { %v787_v26 = vpack.c.bf16 %v763_v48, %v762_v45  ;;  %v770_v45 = vand.u32 2147483647, %v738_v40 }
  0xf0   : > { %v579_v50 = vpop.permute.xlu1 %578 }
  0xf1   : > { %v661_v52 = vmul.f32 %v1757_v47, %v579_v50  ;;  %1503 = vmatmul.mubr.msk.bf16.gmra.mrb[12].mxu0 %vm819_vm0, %v787_v26  ;;  %v444_v50 = vpop.permute.xlu0 %443 }
  0xf3   : > { %v693_v55 = vadd.f32 %v661_v52, %v496_v51 }
  0xf4   : > { %v583_v56 = vpop.permute.xlu1 %582 }
  0xf5   : > { %v662_v57 = vmul.f32 %v1757_v47, %v583_v56  ;;  %v732_v58 = vadd.f32 %v1775_v61, %v693_v55  ;;  %v505_v56 = vmul.f32 %v1762_v49, %v444_v50 }
  0xf7   : > { %v694_v7 = vadd.f32 %v662_v57, %v497_v54  ;;  %v764_v2 = vand.u32 2147483647, %v732_v58  ;;  %v449_v58 = vpop.permute.xlu0 %448 }
  0xf8   : > { %v506_v62 = vmul.f32 %v1762_v49, %v449_v58 }
  0xf9   : > { %v733_v63 = vadd.f32 %v1775_v61, %v694_v7  ;;  %v414_v1 = vpop.permute.xlu1 %413 }
  0xfa   : > { %v499_v0 = vmul.f32 %v1762_v49, %v414_v1  ;;  %v703_v4 = vadd.f32 %v671_v60, %v506_v62 }
  0xfb   : > { %v765_v3 = vand.u32 2147483647, %v733_v63  ;;  %v464_v46 = vpop.permute.xlu0 %463 }
  0xfc   : > { %v742_v8 = vadd.f32 %v1775_v61, %v703_v4 }
  0xfd   : > { %v788_v5 = vpack.c.bf16 %v765_v3, %v764_v2 }
  0xfe   : > { %v591_v6 = vpop.permute.xlu1 %590 }
  0xff   : > { %v664_v36 = vmul.f32 %v1757_v47, %v591_v6  ;;  %1506 = vmatprep.mubr.msk.bf16.mxu0 %vm819_vm0, %v788_v5 }
 0x101   : > { %v696_v9 = vadd.f32 %v664_v36, %v499_v0 }
 0x103   : > { %v735_v41 = vadd.f32 %v1775_v61, %v696_v9  ;;  %v419_v10 = vpop.permute.xlu1 %418 }
 0x104   : > { %v500_v15 = vmul.f32 %v1762_v49, %v419_v10 }
 0x105   : > { %v767_v12 = vand.u32 2147483647, %v735_v41 }
 0x107   : > { %v789_v13 = vpack.c.bf16 %v767_v12, %v766_v11  ;;  %v774_v11 = vand.u32 2147483647, %v742_v8 }
 0x108   : > { %v595_v14 = vpop.permute.xlu1 %594 }
 0x109   : > { %v665_v16 = vmul.f32 %v1757_v47, %v595_v14  ;;  %1507 = vmatmul.mubr.msk.bf16.gmra.mrb[16].mxu0 %vm819_vm0, %v789_v13  ;;  %v469_v14 = vpop.permute.xlu0 %468 }
 0x10a   : > { %v510_v25 = vmul.f32 %v1762_v49, %v469_v14 }
 0x10b   : > { %v697_v18 = vadd.f32 %v665_v16, %v500_v15 }
 0x10c   : > { %v599_v19 = vpop.permute.xlu1 %598 }
 0x10d   : > { %v666_v21 = vmul.f32 %v1757_v47, %v599_v19  ;;  %v736_v22 = vadd.f32 %v1775_v61, %v697_v18 }
 0x10f   : > { %v698_v23 = vadd.f32 %v666_v21, %v501_v20  ;;  %v768_v30 = vand.u32 2147483647, %v736_v22  ;;  %v509_v20 = vmul.f32 %v1762_v49, %v464_v46  ;;  %v635_v22 = vpop.permute.xlu0 %634 }
 0x110   : > { %v675_v27 = vmul.f32 %v1757_v47, %v635_v22 }
 0x111   : > { %v737_v28 = vadd.f32 %v1775_v61, %v698_v23  ;;  %v434_v29 = vpop.permute.xlu1 %433 }
 0x112   : > { %v503_v35 = vmul.f32 %v1762_v49, %v434_v29  ;;  %v707_v32 = vadd.f32 %v675_v27, %v510_v25 }
 0x113   : > { %v769_v31 = vand.u32 2147483647, %v737_v28 }
 0x115   : > { %v790_v34 = vpack.c.bf16 %v769_v31, %v768_v30 }
 0x116   : > { %v607_v37 = vpop.permute.xlu1 %606 }
 0x117   : > { %v668_v38 = vmul.f32 %v1757_v47, %v607_v37  ;;  %1510 = vmatprep.mubr.msk.bf16.mxu0 %vm819_vm0, %v790_v34 }
 0x119   : > { %v700_v42 = vadd.f32 %v668_v38, %v503_v35  ;;  %v746_v38 = vadd.f32 %v1775_v61, %v707_v32 }
 0x11b   : > { %v739_v39 = vadd.f32 %v1775_v61, %v700_v42  ;;  %v439_v44 = vpop.permute.xlu1 %438  ;;  %v778_v42 = vand.u32 2147483647, %v746_v38 }
 0x11c   : > { %v504_v52 = vmul.f32 %v1762_v49, %v439_v44 }
 0x11d   : > { %v771_v48 = vand.u32 2147483647, %v739_v39 }
 0x11f   : > { %v791_v26 = vpack.c.bf16 %v771_v48, %v770_v45  ;;  %v1904_v45 = vld [vmem:[%s2069_s4] ss:$0 sm:$0xff] }
 0x120   : > { %v611_v51 = vpop.permute.xlu1 %610 }
 0x121   : > { %v669_v53 = vmul.f32 %v1757_v47, %v611_v51  ;;  %1511 = vmatmul.mubr.msk.bf16.gmra.mrb[20].mxu0 %vm819_vm0, %v791_v26 }
 0x123   : > { %v701_v54 = vadd.f32 %v669_v53, %v504_v52 }
 0x124   : > { %v615_v55 = vpop.permute.xlu1 %614 }
 0x125   : > { %v670_v57 = vmul.f32 %v1757_v47, %v615_v55  ;;  %v740_v7 = vadd.f32 %v1775_v61, %v701_v54 }
 0x127   : > { %v702_v59 = vadd.f32 %v670_v57, %v505_v56  ;;  %v772_v2 = vand.u32 2147483647, %v740_v7 }
 0x129   : > { %v741_v63 = vadd.f32 %v1775_v61, %v702_v59  ;;  %v454_v1 = vpop.permute.xlu1 %453 }
 0x12a   : > { %v507_v0 = vmul.f32 %v1762_v49, %v454_v1 }
 0x12b   : > { %v773_v3 = vand.u32 2147483647, %v741_v63 }
 0x12d   : > { %v792_v5 = vpack.c.bf16 %v773_v3, %v772_v2 }
 0x12e   : > { %v623_v6 = vpop.permute.xlu1 %622 }
 0x12f   : > { %v672_v36 = vmul.f32 %v1757_v47, %v623_v6  ;;  %1514 = vmatprep.mubr.msk.bf16.mxu0 %vm819_vm0, %v792_v5 }
 0x131   : > { %v704_v9 = vadd.f32 %v672_v36, %v507_v0 }
 0x133   : > { %v743_v41 = vadd.f32 %v1775_v61, %v704_v9  ;;  %v459_v10 = vpop.permute.xlu1 %458 }
 0x134   : > { %v508_v16 = vmul.f32 %v1762_v49, %v459_v10 }
 0x135   : > { %v775_v12 = vand.u32 2147483647, %v743_v41 }
 0x137   : > { %v793_v13 = vpack.c.bf16 %v775_v12, %v774_v11 }
 0x138   : > { %v627_v15 = vpop.permute.xlu1 %626 }
 0x139   : > { %v673_v17 = vmul.f32 %v1757_v47, %v627_v15  ;;  %1515 = vmatmul.mubr.msk.bf16.gmra.mrb[24].mxu0 %vm819_vm0, %v793_v13 }
 0x13b   : > { %v705_v18 = vadd.f32 %v673_v17, %v508_v16 }
 0x13c   : > { %v631_v19 = vpop.permute.xlu1 %630 }
 0x13d   : > { %v674_v21 = vmul.f32 %v1757_v47, %v631_v19  ;;  %v744_v23 = vadd.f32 %v1775_v61, %v705_v18 }
 0x13f   : > { %v706_v24 = vadd.f32 %v674_v21, %v509_v20  ;;  %v776_v30 = vand.u32 2147483647, %v744_v23 }
 0x141   : > { %v745_v28 = vadd.f32 %v1775_v61, %v706_v24  ;;  %v474_v29 = vpop.permute.xlu1 %473 }
 0x142   : > { %v511_v37 = vmul.f32 %v1762_v49, %v474_v29 }
 0x143   : > { %v777_v31 = vand.u32 2147483647, %v745_v28 }
 0x145   : > { %v794_v33 = vpack.c.bf16 %v777_v31, %v776_v30 }
 0x146   : > { %v639_v34 = vpop.permute.xlu1 %638 }
 0x147   : > { %v676_v35 = vmul.f32 %v1757_v47, %v639_v34  ;;  %1518 = vmatprep.mubr.msk.bf16.mxu0 %vm819_vm0, %v794_v33 }
 0x149   : > { %v708_v43 = vadd.f32 %v676_v35, %v511_v37 }
 0x14b   : > { %v747_v40 = vadd.f32 %v1775_v61, %v708_v43 }
 0x14d   : > { %v779_v39 = vand.u32 2147483647, %v747_v40 }
 0x14f   : > { %v795_v44 = vpack.c.bf16 %v779_v39, %v778_v42 }
 0x151   : > { %1519 = vmatmul.mubr.msk.bf16.gmra.mrb[28].mxu0 %vm819_vm0, %v795_v44 }
 0x193   : > { %v1492_v49 = vpop.f32.mrb[0].mxu0 }
 0x194   : > { %v911_v47 = vadd.f32 %v1492_v49, %v1904_v45  ;;  %v902_v48 = vpop.f32.mrb[1].mxu0 }
 0x195   : > { %v903_v26 = vadd.f32 %v1904_v45, %v902_v48  ;;  %v1493_v50 = vpop.f32.mrb[2].mxu0 }
 0x196   : > { %v914_v51 = vadd.f32 %v1493_v50, %v1904_v45  ;;  %v905_v61 = vpop.f32.mrb[3].mxu0  ;;  %v1031_v53 = vand.u32 2147483647, %v911_v47 }
 0x197   : > { %v906_v52 = vadd.f32 %v1904_v45, %v905_v61  ;;  %v1029_v55 = vand.u32 2147483647, %v903_v26 }
 0x198   : > { %v1032_v54 = vand.u32 2147483647, %v914_v51 }
 0x199   : > { %v1030_v56 = vand.u32 2147483647, %v906_v52 }
 0x19a   : > { %v1062_v57 = vpack.c.bf16 %v1032_v54, %v1031_v53 }
 0x19b   : > { %v1496_v58 = vpop.f32.mrb[4].mxu0  ;;  %v1061_v7 = vpack.c.bf16 %v1030_v56, %v1029_v55 }
 0x19c   : > { %v927_v59 = vadd.f32 %v1496_v58, %v1904_v45  ;;  %v918_v60 = vpop.f32.mrb[5].mxu0 }
 0x19d   : > { %v919_v62 = vadd.f32 %v1904_v45, %v918_v60  ;;  %v1497_v63 = vpop.f32.mrb[6].mxu0  ;;  %1526 = vmatprep.mubr.msk.bf16.mxu1 %vm819_vm0, %v1061_v7 }
 0x19e   : > { %v930_v1 = vadd.f32 %v1497_v63, %v1904_v45  ;;  %v921_v2 = vpop.f32.mrb[7].mxu0  ;;  %1527 = vmatmul.mubr.msk.bf16.vlgmr.msra.gmra.mrb[0].mxu1 %vm819_vm0, %v1062_v57  ;;  %v1035_v4 = vand.u32 2147483647, %v927_v59 }
 0x19f   : > { %v922_v3 = vadd.f32 %v1904_v45, %v921_v2  ;;  %v1033_v6 = vand.u32 2147483647, %v919_v62 }
 0x1a0   : > { %v1036_v5 = vand.u32 2147483647, %v930_v1 }
 0x1a1   : > { %v1034_v0 = vand.u32 2147483647, %v922_v3 }
 0x1a2   : > { %v1064_v36 = vpack.c.bf16 %v1036_v5, %v1035_v4 }
 0x1a3   : > { %v1063_v8 = vpack.c.bf16 %v1034_v0, %v1033_v6 }
 0x1a5   : > { %1530 = vmatprep.mubr.msk.bf16.mxu1 %vm819_vm0, %v1063_v8 }
 0x1a6   : > { %1531 = vmatmul.mubr.msk.bf16.gmra.mrb[4].mxu1 %vm819_vm0, %v1064_v36 }
 0x1ac   : > { %v1500_v9 = vpop.f32.mrb[8].mxu0 }
 0x1ad   : > { %v943_v46 = vadd.f32 %v1500_v9, %v1904_v45  ;;  %v934_v41 = vpop.f32.mrb[9].mxu0 }
 0x1ae   : > { %v935_v10 = vadd.f32 %v1904_v45, %v934_v41  ;;  %v1501_v11 = vpop.f32.mrb[10].mxu0 }
 0x1af   : > { %v946_v12 = vadd.f32 %v1501_v11, %v1904_v45  ;;  %v937_v13 = vpop.f32.mrb[11].mxu0  ;;  %v1039_v15 = vand.u32 2147483647, %v943_v46 }
 0x1b0   : > { %v938_v14 = vadd.f32 %v1904_v45, %v937_v13  ;;  %v1037_v17 = vand.u32 2147483647, %v935_v10 }
 0x1b1   : > { %v1040_v16 = vand.u32 2147483647, %v946_v12 }
 0x1b2   : > { %v1038_v18 = vand.u32 2147483647, %v938_v14 }
 0x1b3   : > { %v1066_v19 = vpack.c.bf16 %v1040_v16, %v1039_v15 }
 0x1b4   : > { %v1065_v20 = vpack.c.bf16 %v1038_v18, %v1037_v17 }
 0x1b6   : > { %1534 = vmatprep.mubr.msk.bf16.mxu1 %vm819_vm0, %v1065_v20 }
 0x1b7   : > { %1535 = vmatmul.mubr.msk.bf16.gmra.mrb[8].mxu1 %vm819_vm0, %v1066_v19 }
 0x1c4   : > { %v1504_v21 = vpop.f32.mrb[12].mxu0 }
 0x1c5   : > { %v959_v22 = vadd.f32 %v1504_v21, %v1904_v45  ;;  %v950_v23 = vpop.f32.mrb[13].mxu0 }
 0x1c6   : > { %v951_v24 = vadd.f32 %v1904_v45, %v950_v23  ;;  %v1505_v25 = vpop.f32.mrb[14].mxu0 }
 0x1c7   : > { %v962_v27 = vadd.f32 %v1505_v25, %v1904_v45  ;;  %v953_v28 = vpop.f32.mrb[15].mxu0  ;;  %v1043_v30 = vand.u32 2147483647, %v959_v22 }
 0x1c8   : > { %v954_v29 = vadd.f32 %v1904_v45, %v953_v28  ;;  %v1041_v32 = vand.u32 2147483647, %v951_v24 }
 0x1c9   : > { %v1044_v31 = vand.u32 2147483647, %v962_v27 }
 0x1ca   : > { %v1042_v33 = vand.u32 2147483647, %v954_v29  ;;  %v1957_v29 = vld [vmem:[%s2071_s6] ss:$0 sm:$0xff] }
 0x1cb   : > { %v1068_v34 = vpack.c.bf16 %v1044_v31, %v1043_v30 }
 0x1cc   : > { %v1067_v37 = vpack.c.bf16 %v1042_v33, %v1041_v32 }
 0x1ce   : > { %1538 = vmatprep.mubr.msk.bf16.mxu1 %vm819_vm0, %v1067_v37 }
 0x1cf   : > { %1539 = vmatmul.mubr.msk.bf16.gmra.mrb[12].mxu1 %vm819_vm0, %v1068_v34 }
 0x1dc   : > { %v1508_v35 = vpop.f32.mrb[16].mxu0 }
 0x1dd   : > { %v975_v38 = vadd.f32 %v1508_v35, %v1904_v45  ;;  %v966_v43 = vpop.f32.mrb[17].mxu0 }
 0x1de   : > { %v967_v40 = vadd.f32 %v1904_v45, %v966_v43  ;;  %v1509_v42 = vpop.f32.mrb[18].mxu0 }
 0x1df   : > { %v978_v39 = vadd.f32 %v1509_v42, %v1904_v45  ;;  %v969_v44 = vpop.f32.mrb[19].mxu0  ;;  %v1047_v47 = vand.u32 2147483647, %v975_v38 }
 0x1e0   : > { %v970_v49 = vadd.f32 %v1904_v45, %v969_v44  ;;  %v1045_v26 = vand.u32 2147483647, %v967_v40 }
 0x1e1   : > { %v1048_v48 = vand.u32 2147483647, %v978_v39 }
 0x1e2   : > { %v1046_v50 = vand.u32 2147483647, %v970_v49 }
 0x1e3   : > { %v1070_v51 = vpack.c.bf16 %v1048_v48, %v1047_v47 }
 0x1e4   : > { %v1069_v61 = vpack.c.bf16 %v1046_v50, %v1045_v26 }
 0x1e6   : > { %1542 = vmatprep.mubr.msk.bf16.mxu1 %vm819_vm0, %v1069_v61 }
 0x1e7   : > { %1543 = vmatmul.mubr.msk.bf16.gmra.mrb[16].mxu1 %vm819_vm0, %v1070_v51 }
 0x1f4   : > { %v1512_v52 = vpop.f32.mrb[20].mxu0 }
 0x1f5   : > { %v991_v53 = vadd.f32 %v1512_v52, %v1904_v45  ;;  %v982_v54 = vpop.f32.mrb[21].mxu0 }
 0x1f6   : > { %v983_v55 = vadd.f32 %v1904_v45, %v982_v54  ;;  %v1513_v56 = vpop.f32.mrb[22].mxu0 }
 0x1f7   : > { %v994_v57 = vadd.f32 %v1513_v56, %v1904_v45  ;;  %v985_v58 = vpop.f32.mrb[23].mxu0  ;;  %v1051_v59 = vand.u32 2147483647, %v991_v53 }
 0x1f8   : > { %v986_v7 = vadd.f32 %v1904_v45, %v985_v58  ;;  %v1049_v62 = vand.u32 2147483647, %v983_v55 }
 0x1f9   : > { %v1052_v60 = vand.u32 2147483647, %v994_v57 }
 0x1fa   : > { %v1050_v63 = vand.u32 2147483647, %v986_v7 }
 0x1fb   : > { %v1072_v1 = vpack.c.bf16 %v1052_v60, %v1051_v59 }
 0x1fc   : > { %v1071_v2 = vpack.c.bf16 %v1050_v63, %v1049_v62 }
 0x1fe   : > { %1546 = vmatprep.mubr.msk.bf16.mxu1 %vm819_vm0, %v1071_v2 }
 0x1ff   : > { %1547 = vmatmul.mubr.msk.bf16.gmra.mrb[20].mxu1 %vm819_vm0, %v1072_v1 }
 0x20c   : > { %v1516_v3 = vpop.f32.mrb[24].mxu0 }
 0x20d   : > { %v1007_v4 = vadd.f32 %v1516_v3, %v1904_v45  ;;  %v998_v5 = vpop.f32.mrb[25].mxu0 }
 0x20e   : > { %v999_v6 = vadd.f32 %v1904_v45, %v998_v5  ;;  %v1517_v0 = vpop.f32.mrb[26].mxu0 }
 0x20f   : > { %v1010_v36 = vadd.f32 %v1517_v0, %v1904_v45  ;;  %v1001_v8 = vpop.f32.mrb[27].mxu0  ;;  %v1055_v46 = vand.u32 2147483647, %v1007_v4 }
 0x210   : > { %v1002_v9 = vadd.f32 %v1904_v45, %v1001_v8  ;;  %v1053_v10 = vand.u32 2147483647, %v999_v6 }
 0x211   : > { %v1056_v41 = vand.u32 2147483647, %v1010_v36 }
 0x212   : > { %v1054_v11 = vand.u32 2147483647, %v1002_v9 }
 0x213   : > { %v1074_v12 = vpack.c.bf16 %v1056_v41, %v1055_v46 }
 0x214   : > { %v1073_v13 = vpack.c.bf16 %v1054_v11, %v1053_v10 }
 0x216   : > { %1550 = vmatprep.mubr.msk.bf16.mxu1 %vm819_vm0, %v1073_v13 }
 0x217   : > { %1551 = vmatmul.mubr.msk.bf16.gmra.mrb[24].mxu1 %vm819_vm0, %v1074_v12 }
 0x224   : > { %v1520_v14 = vpop.f32.mrb[28].mxu0 }
 0x225   : > { %v1023_v15 = vadd.f32 %v1520_v14, %v1904_v45  ;;  %v1014_v16 = vpop.f32.mrb[29].mxu0 }
 0x226   : > { %v1015_v17 = vadd.f32 %v1904_v45, %v1014_v16  ;;  %v1521_v18 = vpop.f32.mrb[30].mxu0 }
 0x227   : > { %v1026_v19 = vadd.f32 %v1521_v18, %v1904_v45  ;;  %v1017_v20 = vpop.f32.mrb[31].mxu0  ;;  %v1059_v22 = vand.u32 2147483647, %v1023_v15 }
 0x228   : > { %v1018_v21 = vadd.f32 %v1904_v45, %v1017_v20  ;;  %v1057_v24 = vand.u32 2147483647, %v1015_v17 }
 0x229   : > { %v1060_v23 = vand.u32 2147483647, %v1026_v19 }
 0x22a   : > { %v1058_v25 = vand.u32 2147483647, %v1018_v21 }
 0x22b   : > { %v1076_v27 = vpack.c.bf16 %v1060_v23, %v1059_v22 }
 0x22c   : > { %v1075_v28 = vpack.c.bf16 %v1058_v25, %v1057_v24 }
 0x22e   : > { %1554 = vmatprep.mubr.msk.bf16.mxu1 %vm819_vm0, %v1075_v28 }
 0x22f   : > { %1555 = vmatmul.mubr.msk.bf16.gmra.mrb[28].mxu1 %vm819_vm0, %v1076_v27 }
 0x271   : > { %v1528_v45 = vpop.f32.mrb[0].mxu1 }
 0x272   : > { %v1191_v30 = vadd.f32 %v1528_v45, %v1957_v29  ;;  %v1182_v31 = vpop.f32.mrb[1].mxu1 }
 0x273   : > { %v1183_v32 = vadd.f32 %v1957_v29, %v1182_v31  ;;  %v1529_v33 = vpop.f32.mrb[2].mxu1 }
 0x274   : > { %1312 = vst.msk [vmem:[%s1964_s8 + $0x10] sm:$0xff] %vm1309_vm1, %v1191_v30  ;;  %v1194_v34 = vadd.f32 %v1529_v33, %v1957_v29  ;;  %v1185_v37 = vpop.f32.mrb[3].mxu1 }
 0x275   : > { %1310 = vst.msk [vmem:[%s1964_s8] sm:$0xff] %vm1309_vm1, %v1183_v32  ;;  %v1186_v35 = vadd.f32 %v1957_v29, %v1185_v37 }
 0x276   : > { %1313 = vst.msk [vmem:[%s1964_s8 + $0x18] sm:$0xff] %vm1309_vm1, %v1194_v34 }
 0x277   : > { %1311 = vst.msk [vmem:[%s1964_s8 + $0x8] sm:$0xff] %vm1309_vm1, %v1186_v35 }
 0x279   : > { %v1532_v38 = vpop.f32.mrb[4].mxu1 }
 0x27a   : > { %v1207_v43 = vadd.f32 %v1532_v38, %v1957_v29  ;;  %v1198_v40 = vpop.f32.mrb[5].mxu1 }
 0x27b   : > { %v1199_v42 = vadd.f32 %v1957_v29, %v1198_v40  ;;  %v1533_v39 = vpop.f32.mrb[6].mxu1 }
 0x27c   : > { %1316 = vst.msk [vmem:[%s1964_s8 + $0x30] sm:$0xff] %vm1309_vm1, %v1207_v43  ;;  %v1210_v44 = vadd.f32 %v1533_v39, %v1957_v29  ;;  %v1201_v49 = vpop.f32.mrb[7].mxu1 }
 0x27d   : > { %1314 = vst.msk [vmem:[%s1964_s8 + $0x20] sm:$0xff] %vm1309_vm1, %v1199_v42  ;;  %v1202_v47 = vadd.f32 %v1957_v29, %v1201_v49 }
 0x27e   : > { %1317 = vst.msk [vmem:[%s1964_s8 + $0x38] sm:$0xff] %vm1309_vm1, %v1210_v44 }
 0x27f   : > { %1315 = vst.msk [vmem:[%s1964_s8 + $0x28] sm:$0xff] %vm1309_vm1, %v1202_v47 }
 0x28a   : > { %v1536_v48 = vpop.f32.mrb[8].mxu1 }
 0x28b   : > { %v1223_v26 = vadd.f32 %v1536_v48, %v1957_v29  ;;  %v1214_v50 = vpop.f32.mrb[9].mxu1 }
 0x28c   : > { %v1215_v51 = vadd.f32 %v1957_v29, %v1214_v50  ;;  %v1537_v61 = vpop.f32.mrb[10].mxu1 }
 0x28d   : > { %1320 = vst.msk [vmem:[%s1964_s8 + $0x50] sm:$0xff] %vm1309_vm1, %v1223_v26  ;;  %v1226_v52 = vadd.f32 %v1537_v61, %v1957_v29  ;;  %v1217_v53 = vpop.f32.mrb[11].mxu1 }
 0x28e   : > { %1318 = vst.msk [vmem:[%s1964_s8 + $0x40] sm:$0xff] %vm1309_vm1, %v1215_v51  ;;  %v1218_v54 = vadd.f32 %v1957_v29, %v1217_v53 }
 0x28f   : > { %1321 = vst.msk [vmem:[%s1964_s8 + $0x58] sm:$0xff] %vm1309_vm1, %v1226_v52 }
 0x290   : > { %1319 = vst.msk [vmem:[%s1964_s8 + $0x48] sm:$0xff] %vm1309_vm1, %v1218_v54 }
 0x2a2   : > { %v1540_v55 = vpop.f32.mrb[12].mxu1 }
 0x2a3   : > { %v1239_v56 = vadd.f32 %v1540_v55, %v1957_v29  ;;  %v1230_v57 = vpop.f32.mrb[13].mxu1 }
 0x2a4   : > { %v1231_v58 = vadd.f32 %v1957_v29, %v1230_v57  ;;  %v1541_v7 = vpop.f32.mrb[14].mxu1 }
 0x2a5   : > { %1324 = vst.msk [vmem:[%s1964_s8 + $0x70] sm:$0xff] %vm1309_vm1, %v1239_v56  ;;  %v1242_v59 = vadd.f32 %v1541_v7, %v1957_v29  ;;  %v1233_v60 = vpop.f32.mrb[15].mxu1 }
 0x2a6   : > { %1322 = vst.msk [vmem:[%s1964_s8 + $0x60] sm:$0xff] %vm1309_vm1, %v1231_v58  ;;  %v1234_v62 = vadd.f32 %v1957_v29, %v1233_v60 }
 0x2a7   : > { %1325 = vst.msk [vmem:[%s1964_s8 + $0x78] sm:$0xff] %vm1309_vm1, %v1242_v59 }
 0x2a8   : > { %1323 = vst.msk [vmem:[%s1964_s8 + $0x68] sm:$0xff] %vm1309_vm1, %v1234_v62 }
 0x2ba   : > { %v1544_v63 = vpop.f32.mrb[16].mxu1 }
 0x2bb   : > { %v1255_v1 = vadd.f32 %v1544_v63, %v1957_v29  ;;  %v1246_v2 = vpop.f32.mrb[17].mxu1 }
 0x2bc   : > { %v1247_v3 = vadd.f32 %v1957_v29, %v1246_v2  ;;  %v1545_v4 = vpop.f32.mrb[18].mxu1 }
 0x2bd   : > { %1328 = vst.msk [vmem:[%s1964_s8 + $0x90] sm:$0xff] %vm1309_vm1, %v1255_v1  ;;  %v1258_v5 = vadd.f32 %v1545_v4, %v1957_v29  ;;  %v1249_v6 = vpop.f32.mrb[19].mxu1 }
 0x2be   : > { %1326 = vst.msk [vmem:[%s1964_s8 + $0x80] sm:$0xff] %vm1309_vm1, %v1247_v3  ;;  %v1250_v0 = vadd.f32 %v1957_v29, %v1249_v6 }
 0x2bf   : > { %1329 = vst.msk [vmem:[%s1964_s8 + $0x98] sm:$0xff] %vm1309_vm1, %v1258_v5 }
 0x2c0   : > { %1327 = vst.msk [vmem:[%s1964_s8 + $0x88] sm:$0xff] %vm1309_vm1, %v1250_v0 }
 0x2d2   : > { %v1548_v36 = vpop.f32.mrb[20].mxu1 }
 0x2d3   : > { %v1271_v8 = vadd.f32 %v1548_v36, %v1957_v29  ;;  %v1262_v9 = vpop.f32.mrb[21].mxu1 }
 0x2d4   : > { %v1263_v46 = vadd.f32 %v1957_v29, %v1262_v9  ;;  %v1549_v41 = vpop.f32.mrb[22].mxu1 }
 0x2d5   : > { %1332 = vst.msk [vmem:[%s1964_s8 + $0xb0] sm:$0xff] %vm1309_vm1, %v1271_v8  ;;  %v1274_v10 = vadd.f32 %v1549_v41, %v1957_v29  ;;  %v1265_v11 = vpop.f32.mrb[23].mxu1 }
 0x2d6   : > { %1330 = vst.msk [vmem:[%s1964_s8 + $0xa0] sm:$0xff] %vm1309_vm1, %v1263_v46  ;;  %v1266_v12 = vadd.f32 %v1957_v29, %v1265_v11 }
 0x2d7   : > { %1333 = vst.msk [vmem:[%s1964_s8 + $0xb8] sm:$0xff] %vm1309_vm1, %v1274_v10 }
 0x2d8   : > { %1331 = vst.msk [vmem:[%s1964_s8 + $0xa8] sm:$0xff] %vm1309_vm1, %v1266_v12 }
 0x2ea   : > { %v1552_v13 = vpop.f32.mrb[24].mxu1 }
 0x2eb   : > { %v1287_v14 = vadd.f32 %v1552_v13, %v1957_v29  ;;  %v1278_v15 = vpop.f32.mrb[25].mxu1 }
 0x2ec   : > { %v1279_v16 = vadd.f32 %v1957_v29, %v1278_v15  ;;  %v1553_v17 = vpop.f32.mrb[26].mxu1 }
 0x2ed   : > { %1336 = vst.msk [vmem:[%s1964_s8 + $0xd0] sm:$0xff] %vm1309_vm1, %v1287_v14  ;;  %v1290_v18 = vadd.f32 %v1553_v17, %v1957_v29  ;;  %v1281_v19 = vpop.f32.mrb[27].mxu1 }
 0x2ee   : > { %1334 = vst.msk [vmem:[%s1964_s8 + $0xc0] sm:$0xff] %vm1309_vm1, %v1279_v16  ;;  %v1282_v20 = vadd.f32 %v1957_v29, %v1281_v19 }
 0x2ef   : > { %1337 = vst.msk [vmem:[%s1964_s8 + $0xd8] sm:$0xff] %vm1309_vm1, %v1290_v18 }
 0x2f0   : > { %1335 = vst.msk [vmem:[%s1964_s8 + $0xc8] sm:$0xff] %vm1309_vm1, %v1282_v20 }
 0x302   : > { %v1556_v21 = vpop.f32.mrb[28].mxu1 }
 0x303   : > { %v1303_v22 = vadd.f32 %v1556_v21, %v1957_v29  ;;  %v1294_v23 = vpop.f32.mrb[29].mxu1 }
 0x304   : > { %v1295_v24 = vadd.f32 %v1957_v29, %v1294_v23  ;;  %v1557_v25 = vpop.f32.mrb[30].mxu1 }
 0x305   : > { %1340 = vst.msk [vmem:[%s1964_s8 + $0xf0] sm:$0xff] %vm1309_vm1, %v1303_v22  ;;  %v1306_v27 = vadd.f32 %v1557_v25, %v1957_v29  ;;  %v1297_v28 = vpop.f32.mrb[31].mxu1 }
 0x306   : > { %1338 = vst.msk [vmem:[%s1964_s8 + $0xe0] sm:$0xff] %vm1309_vm1, %v1295_v24  ;;  %v1298_v45 = vadd.f32 %v1957_v29, %v1297_v28 }
 0x307   : > { %1341 = vst.msk [vmem:[%s1964_s8 + $0xf8] sm:$0xff] %vm1309_vm1, %v1306_v27 }
 0x308   : > { %1339 = vst.msk [vmem:[%s1964_s8 + $0xe8] sm:$0xff] %vm1309_vm1, %v1298_v45 }
 0x309 PF: > { %s17_s24 = sadd.s32 1, %s1612_s24  }
 0x30a   : > { %p14_p4 = scmp.ge.s32.totalorder %s17_s24, 4  }
 0x30c   :  { %16 = sbr.rel (!%p14_p4) target bundleno = 1 (0x1), region = 78 }

// kernel: new_fcn_forward.1
= control target key start
LH: loop header
LB: loop body
LE: loop exit
PB: predicated region body
PF: predicated region fallthrough
CT: control target
= control target key end

     0   :  { %s1656_s24 = smov 0   ;;  %s2065_s0 = inlined_call_operand.vmem [shape: f32[512,2], index: 0, kind: input, shape index: {}]   ;;  %s2066_s1 = inlined_call_operand.vmem [shape: f32[2,32], index: 1, kind: input, shape index: {}]   ;;  %s2067_s2 = inlined_call_operand.vmem [shape: f32[1,32], index: 2, kind: input, shape index: {}]   ;;  %s2068_s3 = inlined_call_operand.vmem [shape: bf16[1,32,32], index: 3, kind: input, shape index: {}]   ;;  %s2069_s4 = inlined_call_operand.vmem [shape: f32[1,1,32], index: 4, kind: input, shape index: {}]   ;;  %s2070_s5 = inlined_call_operand.vmem [shape: bf16[32,8], index: 5, kind: input, shape index: {}]   ;;  %s2071_s6 = inlined_call_operand.vmem [shape: f32[1,8], index: 6, kind: input, shape index: {}]   ;;  %s2072_s7 = inlined_call_operand.vmem [shape: f32[512,8], index: 7, kind: output, shape index: {}]  }
   0x1 LB: > { %s1398_s25 = sadd.s32 4294967295, %s1612_s24   ;;  %p1402_p0 = scmp.ge.s32.totalorder %s1612_s24, 1  ;;  %s1612_s24 = sphi %s1656_s24, %s17_s24  }
   0x2   : > { %p238_p1 = scmp.lt.s32.totalorder %s1612_s24, 3 }
   0x4   : > { %p239_p2 = pnand %p1402_p0, %p238_p1 }
   0x5   : > { %s1403_s26 = sshll.u32 (!%p239_p2), %s1398_s25, 5  ;;  %v1614_v0 = vmov (!%p239_p2), 1   ;;  %v1615_v7 = vmov (!%p239_p2), 0   ;;  %v1602_v15 = vld [vmem:[%s2068_s3] sm:$0xff] (!%p239_p2)   ;;  %v1603_v17 = vld [vmem:[%s2068_s3 + $0x8] sm:$0xff] (!%p239_p2)   ;;  %vm819_vm0 = vcmask (!%p239_p2), 261120  }
   0x6   : > { %242 = sbr.rel (%p239_p2) target bundleno = 777 (0x309), region = 48  ;;  %1570 = vset.pattern.permute.xlu0 (!%p239_p2), %v1614_v0  ;;  %1568 = vset.pattern.permute.xlu1 (!%p239_p2), %v1614_v0  ;;  %p271_p3 = scmp.lt.s32.totalorder (!%p239_p2), %s1403_s26, 63  ;;  %v1757_v47 = vld [vmem:[%s2066_s1 + $0x1] ss:$0 sm:$0xff] (!%p239_p2)  ;;  %v1762_v49 = vld [vmem:[%s2066_s1] ss:$0 sm:$0xff] (!%p239_p2) }
   0x7   : > { %1486 = vmatprep.subr.bf16.mxu0 (!%p239_p2), %v1602_v15  ;;  %v1775_v61 = vld [vmem:[%s2067_s2] ss:$0 sm:$0xff] (!%p239_p2)  ;;  %vm1309_vm1 = vcmask (!%p239_p2), 64512  }
   0x8   : > { %1487 = vmatpush3.bf16.msra.mxu0 (!%p239_p2), %v1602_v15 }
   0x9   : > { %1488 = vmatprep.subr.bf16.mxu0 (!%p239_p2), %v1603_v17 }
   0xc   : > { %1489 = vmatpush3.bf16.msra.mxu0 (!%p239_p2), %v1603_v17 }
   0xd   : > { %s2074_s26 = smov (!%p271_p3, %s1403_s26), 63 }
   0xe   : > { %s1404_s27 = sshll.u32 %s2074_s26, 3 }
   0xf   : > { %s1674_s30 = scalar_lea.vmem %s2065_s0, %s1404_s27  ;;  %s1964_s8 = scalar_lea.vmem %s2072_s7, %s1404_s27 }
  0x10   : > { %v285_v1 = vld [vmem:[%s1674_s30 + $0x10] sm:$0xff]  ;;  %v283_v2 = vld [vmem:[%s1674_s30] sm:$0xff]  ;;  %v284_v4 = vld [vmem:[%s1674_s30 + $0x8] sm:$0xff] }
  0x11   : > { %522 = vperm.xlu0 %1570, %v285_v1   ;;  %514 = vperm.xlu1 %1568, %v283_v2   ;;  %v289_v3 = vld [vmem:[%s1674_s30 + $0x30] sm:$0xff]  ;;  %v286_v6 = vld [vmem:[%s1674_s30 + $0x18] sm:$0xff]  ;;  %v287_v10 = vld [vmem:[%s1674_s30 + $0x20] sm:$0xff] }
  0x12   : > { %v293_v5 = vld [vmem:[%s1674_s30 + $0x50] sm:$0xff]  ;;  %v288_v13 = vld [vmem:[%s1674_s30 + $0x28] sm:$0xff]  ;;  %v290_v14 = vld [vmem:[%s1674_s30 + $0x38] sm:$0xff] }
  0x13   : > { %v297_v8 = vld [vmem:[%s1674_s30 + $0x70] sm:$0xff]  ;;  %v291_v16 = vld [vmem:[%s1674_s30 + $0x40] sm:$0xff]  ;;  %v292_v18 = vld [vmem:[%s1674_s30 + $0x48] sm:$0xff] }
  0x14   : > { %v301_v9 = vld [vmem:[%s1674_s30 + $0x90] sm:$0xff]  ;;  %v296_v19 = vld [vmem:[%s1674_s30 + $0x68] sm:$0xff]  ;;  %v294_v20 = vld [vmem:[%s1674_s30 + $0x58] sm:$0xff] }
  0x15   : > { %538 = vperm.xlu0 %1570, %v289_v3   ;;  %518 = vperm.xlu1 %1568, %v284_v4   ;;  %v305_v11 = vld [vmem:[%s1674_s30 + $0xb0] sm:$0xff]  ;;  %v300_v21 = vld [vmem:[%s1674_s30 + $0x88] sm:$0xff]  ;;  %v295_v22 = vld [vmem:[%s1674_s30 + $0x60] sm:$0xff] }
  0x16   : > { %v309_v12 = vld [vmem:[%s1674_s30 + $0xd0] sm:$0xff]  ;;  %v304_v23 = vld [vmem:[%s1674_s30 + $0xa8] sm:$0xff]  ;;  %v298_v25 = vld [vmem:[%s1674_s30 + $0x78] sm:$0xff] }
  0x17   : > { %v308_v24 = vld [vmem:[%s1674_s30 + $0xc8] sm:$0xff]  ;;  %v299_v27 = vld [vmem:[%s1674_s30 + $0x80] sm:$0xff]  ;;  %v313_v28 = vld [vmem:[%s1674_s30 + $0xf0] sm:$0xff] }
  0x18   : > { %v1720_v26 = vld [vmem:[%s1674_s30 + $0xe8] sm:$0xff]  ;;  %v302_v29 = vld [vmem:[%s1674_s30 + $0x98] sm:$0xff]  ;;  %v303_v30 = vld [vmem:[%s1674_s30 + $0xa0] sm:$0xff] }
  0x19   : > { %554 = vperm.xlu0 %1570, %v293_v5   ;;  %1569 = vset.pattern.permute.xlu1 %v1615_v7  ;;  %v306_v31 = vld [vmem:[%s1674_s30 + $0xb8] sm:$0xff]  ;;  %v307_v38 = vld [vmem:[%s1674_s30 + $0xc0] sm:$0xff] }
  0x1a   : > { %333 = vperm.xlu1 %1569, %v286_v6   ;;  %v310_v44 = vld [vmem:[%s1674_s30 + $0xd8] sm:$0xff]  ;;  %v311_v58 = vld [vmem:[%s1674_s30 + $0xe0] sm:$0xff] }
  0x1d   : > { %570 = vperm.xlu0 %1570, %v297_v8  }
  0x1e   : > { %1571 = vset.pattern.permute.xlu1 %v1614_v0 }
  0x1f   : > { %526 = vperm.xlu1 %1571, %v286_v6  }
  0x21   : > { %586 = vperm.xlu0 %1570, %v301_v9  }
  0x23   : > { %1572 = vset.pattern.permute.xlu1 %v1615_v7 }
  0x24   : > { %338 = vperm.xlu1 %1572, %v287_v10  }
  0x25   : > { %602 = vperm.xlu0 %1570, %v305_v11  }
  0x28   : > { %1573 = vset.pattern.permute.xlu1 %v1614_v0 }
  0x29   : > { %618 = vperm.xlu0 %1570, %v309_v12   ;;  %530 = vperm.xlu1 %1573, %v287_v10  }
  0x2d   : > { %1595 = vset.pattern.permute.xlu0 %v1615_v7  ;;  %534 = vperm.xlu1 %1573, %v288_v13  }
  0x2e   : > { %318 = vperm.xlu0 %1595, %v283_v2  }
  0x31   : > { %1574 = vset.pattern.permute.xlu1 %v1615_v7 }
  0x32   : > { %323 = vperm.xlu0 %1595, %v284_v4   ;;  %353 = vperm.xlu1 %1574, %v290_v14  }
  0x36   : > { %328 = vperm.xlu0 %1595, %v285_v1   ;;  %1575 = vset.pattern.permute.xlu1 %v1614_v0 }
  0x37   : > { %542 = vperm.xlu1 %1575, %v290_v14  }
  0x3a   : > { %343 = vperm.xlu0 %1595, %v288_v13  }
  0x3b   : > { %1576 = vset.pattern.permute.xlu1 %v1615_v7 }
  0x3c   : > { %358 = vperm.xlu1 %1576, %v291_v16  }
  0x3e   : > { %348 = vperm.xlu0 %1595, %v289_v3  }
  0x40   : > { %1577 = vset.pattern.permute.xlu1 %v1614_v0 }
  0x41   : > { %546 = vperm.xlu1 %1577, %v291_v16  }
  0x42   : > { %363 = vperm.xlu0 %1595, %v292_v18  }
  0x45   : > { %550 = vperm.xlu1 %1577, %v292_v18  }
  0x46   : > { %368 = vperm.xlu0 %1595, %v293_v5  }
  0x49   : > { %1578 = vset.pattern.permute.xlu1 %v1615_v7 }
  0x4a   : > { %383 = vperm.xlu0 %1595, %v296_v19   ;;  %373 = vperm.xlu1 %1578, %v294_v20  }
  0x4e   : > { %388 = vperm.xlu0 %1595, %v297_v8   ;;  %1579 = vset.pattern.permute.xlu1 %v1614_v0 }
  0x4f   : > { %558 = vperm.xlu1 %1579, %v294_v20  }
  0x52   : > { %403 = vperm.xlu0 %1595, %v300_v21  }
  0x53   : > { %1580 = vset.pattern.permute.xlu1 %v1615_v7 }
  0x54   : > { %378 = vperm.xlu1 %1580, %v295_v22  }
  0x56   : > { %408 = vperm.xlu0 %1595, %v301_v9  }
  0x58   : > { %1581 = vset.pattern.permute.xlu1 %v1614_v0 }
  0x59   : > { %562 = vperm.xlu1 %1581, %v295_v22  }
  0x5a   : > { %423 = vperm.xlu0 %1595, %v304_v23  }
  0x5d   : > { %566 = vperm.xlu1 %1581, %v296_v19  }
  0x5e   : > { %428 = vperm.xlu0 %1595, %v305_v11  }
  0x61   : > { %1582 = vset.pattern.permute.xlu1 %v1615_v7 }
  0x62   : > { %443 = vperm.xlu0 %1595, %v308_v24   ;;  %393 = vperm.xlu1 %1582, %v298_v25  }
  0x66   : > { %448 = vperm.xlu0 %1595, %v309_v12   ;;  %1583 = vset.pattern.permute.xlu1 %v1614_v0 }
  0x67   : > { %574 = vperm.xlu1 %1583, %v298_v25  }
  0x6a   : > { %463 = vperm.xlu0 %1595, %v1720_v26  }
  0x6b   : > { %1584 = vset.pattern.permute.xlu1 %v1615_v7 }
  0x6c   : > { %398 = vperm.xlu1 %1584, %v299_v27  }
  0x6e   : > { %468 = vperm.xlu0 %1595, %v313_v28  }
  0x70   : > { %1585 = vset.pattern.permute.xlu1 %v1614_v0 }
  0x71   : > { %578 = vperm.xlu1 %1585, %v299_v27  }
  0x72   : > { %1600 = vset.pattern.permute.xlu0 %v1614_v0 }
  0x73   : > { %634 = vperm.xlu0 %1600, %v313_v28  }
  0x75   : > { %582 = vperm.xlu1 %1585, %v300_v21  }
  0x79   : > { %1586 = vset.pattern.permute.xlu1 %v1615_v7 }
  0x7a   : > { %413 = vperm.xlu1 %1586, %v302_v29  }
  0x7e   : > { %1587 = vset.pattern.permute.xlu1 %v1614_v0 }
  0x7f   : > { %590 = vperm.xlu1 %1587, %v302_v29  }
  0x83   : > { %1588 = vset.pattern.permute.xlu1 %v1615_v7 }
  0x84   : > { %418 = vperm.xlu1 %1588, %v303_v30  }
  0x88   : > { %1589 = vset.pattern.permute.xlu1 %v1614_v0 }
  0x89   : > { %594 = vperm.xlu1 %1589, %v303_v30  }
  0x8d   : > { %598 = vperm.xlu1 %1589, %v304_v23  }
  0x90   : > { %v515_v32 = vpop.permute.xlu1 %514  ;;  %v523_v33 = vpop.permute.xlu0 %522 }
  0x91   : > { %1590 = vset.pattern.permute.xlu1 %v1615_v7  ;;  %v645_v51 = vmul.f32 %v1757_v47, %v515_v32  ;;  %v647_v1 = vmul.f32 %v1757_v47, %v523_v33 }
  0x92   : > { %433 = vperm.xlu1 %1590, %v306_v31  }
  0x94   : > { %v519_v34 = vpop.permute.xlu1 %518  ;;  %v1736_v35 = vpop.permute.xlu0 %538 }
  0x95   : > { %v646_v59 = vmul.f32 %v1757_v47, %v519_v34  ;;  %v651_v22 = vmul.f32 %v1757_v47, %v1736_v35  ;;  %v314_v34 = vld [vmem:[%s1674_s30 + $0xf8] sm:$0xff] }
  0x96   : > { %1591 = vset.pattern.permute.xlu1 %v1614_v0 }
  0x97   : > { %606 = vperm.xlu1 %1591, %v306_v31  }
  0x98   : > { %v1739_v36 = vpop.permute.xlu0 %554 }
  0x99   : > { %v334_v37 = vpop.permute.xlu1 %333 }
  0x9a   : > { %v483_v55 = vmul.f32 %v1762_v49, %v334_v37 }
  0x9b   : > { %1592 = vset.pattern.permute.xlu1 %v1615_v7 }
  0x9c   : > { %438 = vperm.xlu1 %1592, %v307_v38   ;;  %v1743_v39 = vpop.permute.xlu0 %570 }
  0x9e   : > { %v527_v40 = vpop.permute.xlu1 %526 }
  0x9f   : > { %v648_v53 = vmul.f32 %v1757_v47, %v527_v40 }
  0xa0   : > { %1593 = vset.pattern.permute.xlu1 %v1614_v0  ;;  %v1746_v41 = vpop.permute.xlu0 %586 }
  0xa1   : > { %610 = vperm.xlu1 %1593, %v307_v38   ;;  %v680_v62 = vadd.f32 %v648_v53, %v483_v55 }
  0xa3   : > { %v339_v42 = vpop.permute.xlu1 %338  ;;  %v719_v10 = vadd.f32 %v1775_v61, %v680_v62 }
  0xa4   : > { %v1748_v43 = vpop.permute.xlu0 %602  ;;  %v484_v4 = vmul.f32 %v1762_v49, %v339_v42 }
  0xa5   : > { %614 = vperm.xlu1 %1593, %v308_v24   ;;  %v751_v23 = vand.u32 2147483647, %v719_v10 }
  0xa8   : > { %v531_v45 = vpop.permute.xlu1 %530  ;;  %v1751_v46 = vpop.permute.xlu0 %618 }
  0xa9   : > { %1594 = vset.pattern.permute.xlu1 %v1615_v7  ;;  %v649_v63 = vmul.f32 %v1757_v47, %v531_v45 }
  0xaa   : > { %453 = vperm.xlu1 %1594, %v310_v44  }
  0xab   : > { %v681_v11 = vadd.f32 %v649_v63, %v484_v4 }
  0xac   : > { %v535_v48 = vpop.permute.xlu1 %534 }
  0xad   : > { %v319_v50 = vpop.permute.xlu0 %318  ;;  %v650_v16 = vmul.f32 %v1757_v47, %v535_v48  ;;  %v720_v25 = vadd.f32 %v1775_v61, %v681_v11 }
  0xae   : > { %v480_v52 = vmul.f32 %v1762_v49, %v319_v50  ;;  %1596 = vset.pattern.permute.xlu1 %v1614_v0 }
  0xaf   : > { %622 = vperm.xlu1 %1596, %v310_v44   ;;  %v752_v37 = vand.u32 2147483647, %v720_v25 }
  0xb0   : > { %v677_v54 = vadd.f32 %v645_v51, %v480_v52 }
  0xb1   : > { %v324_v56 = vpop.permute.xlu0 %323  ;;  %v354_v57 = vpop.permute.xlu1 %353 }
  0xb2   : > { %v481_v60 = vmul.f32 %v1762_v49, %v324_v56  ;;  %v716_v3 = vadd.f32 %v1775_v61, %v677_v54  ;;  %v487_v18 = vmul.f32 %v1762_v49, %v354_v57 }
  0xb3   : > { %1597 = vset.pattern.permute.xlu1 %v1615_v7 }
  0xb4   : > { %v678_v2 = vadd.f32 %v646_v59, %v481_v60  ;;  %458 = vperm.xlu1 %1597, %v311_v58   ;;  %v748_v14 = vand.u32 2147483647, %v716_v3 }
  0xb5   : > { %v329_v5 = vpop.permute.xlu0 %328 }
  0xb6   : > { %v482_v6 = vmul.f32 %v1762_v49, %v329_v5  ;;  %v543_v8 = vpop.permute.xlu1 %542  ;;  %v717_v9 = vadd.f32 %v1775_v61, %v678_v2 }
  0xb7   : > { %v652_v13 = vmul.f32 %v1757_v47, %v543_v8 }
  0xb8   : > { %v679_v12 = vadd.f32 %v647_v1, %v482_v6  ;;  %1598 = vset.pattern.permute.xlu1 %v1614_v0  ;;  %v749_v15 = vand.u32 2147483647, %v717_v9 }
  0xb9   : > { %v344_v17 = vpop.permute.xlu0 %343  ;;  %626 = vperm.xlu1 %1598, %v311_v58   ;;  %v684_v28 = vadd.f32 %v652_v13, %v487_v18 }
  0xba   : > { %v718_v19 = vadd.f32 %v1775_v61, %v679_v12  ;;  %v485_v20 = vmul.f32 %v1762_v49, %v344_v17  ;;  %v780_v21 = vpack.c.bf16 %v749_v15, %v748_v14 }
  0xbb   : > { %v359_v24 = vpop.permute.xlu1 %358  ;;  %v723_v35 = vadd.f32 %v1775_v61, %v684_v28 }
  0xbc   : > { %v750_v27 = vand.u32 2147483647, %v718_v19  ;;  %v682_v29 = vadd.f32 %v650_v16, %v485_v20  ;;  %1490 = vmatprep.mubr.msk.bf16.mxu0 %vm819_vm0, %v780_v21  ;;  %v488_v44 = vmul.f32 %v1762_v49, %v359_v24 }
  0xbd   : > { %v349_v30 = vpop.permute.xlu0 %348  ;;  %630 = vperm.xlu1 %1598, %v1720_v26   ;;  %v755_v53 = vand.u32 2147483647, %v723_v35 }
  0xbe   : > { %v781_v31 = vpack.c.bf16 %v751_v23, %v750_v27  ;;  %v721_v32 = vadd.f32 %v1775_v61, %v682_v29  ;;  %v486_v33 = vmul.f32 %v1762_v49, %v349_v30  ;;  %v659_v27 = vmul.f32 %v1757_v47, %v1743_v39 }
  0xc0   : > { %v753_v38 = vand.u32 2147483647, %v721_v32  ;;  %v683_v40 = vadd.f32 %v651_v22, %v486_v33  ;;  %1491 = vmatmul.mubr.msk.bf16.vlgmr.msra.gmra.mrb[0].mxu0 %vm819_vm0, %v781_v31  ;;  %v547_v42 = vpop.permute.xlu1 %546 }
  0xc1   : > { %v653_v45 = vmul.f32 %v1757_v47, %v547_v42  ;;  %v364_v48 = vpop.permute.xlu0 %363  ;;  %1599 = vset.pattern.permute.xlu1 %v1615_v7  ;;  %v655_v7 = vmul.f32 %v1757_v47, %v1739_v36 }
  0xc2   : > { %v782_v26 = vpack.c.bf16 %v753_v38, %v752_v37  ;;  %v722_v50 = vadd.f32 %v1775_v61, %v683_v40  ;;  %473 = vperm.xlu1 %1599, %v314_v34   ;;  %v489_v52 = vmul.f32 %v1762_v49, %v364_v48 }
  0xc3   : > { %v685_v51 = vadd.f32 %v653_v45, %v488_v44 }
  0xc4   : > { %v754_v54 = vand.u32 2147483647, %v722_v50  ;;  %1494 = vmatprep.mubr.msk.bf16.mxu0 %vm819_vm0, %v782_v26  ;;  %v551_v55 = vpop.permute.xlu1 %550 }
  0xc5   : > { %v654_v56 = vmul.f32 %v1757_v47, %v551_v55  ;;  %v369_v58 = vpop.permute.xlu0 %368  ;;  %v724_v59 = vadd.f32 %v1775_v61, %v685_v51 }
  0xc6   : > { %v783_v57 = vpack.c.bf16 %v755_v53, %v754_v54  ;;  %1601 = vset.pattern.permute.xlu1 %v1614_v0  ;;  %v490_v62 = vmul.f32 %v1762_v49, %v369_v58 }
  0xc7   : > { %v686_v60 = vadd.f32 %v654_v56, %v489_v52  ;;  %638 = vperm.xlu1 %1601, %v314_v34   ;;  %v756_v2 = vand.u32 2147483647, %v724_v59 }
  0xc8   : > { %1495 = vmatmul.mubr.msk.bf16.gmra.mrb[4].mxu0 %vm819_vm0, %v783_v57  ;;  %v687_v4 = vadd.f32 %v655_v7, %v490_v62 }
  0xc9   : > { %v725_v63 = vadd.f32 %v1775_v61, %v686_v60  ;;  %v374_v1 = vpop.permute.xlu1 %373  ;;  %v384_v18 = vpop.permute.xlu0 %383  ;;  %v663_v60 = vmul.f32 %v1757_v47, %v1746_v41 }
  0xca   : > { %v726_v0 = vadd.f32 %v1775_v61, %v687_v4  ;;  %v491_v36 = vmul.f32 %v1762_v49, %v374_v1  ;;  %v493_v19 = vmul.f32 %v1762_v49, %v384_v18 }
  0xcb   : > { %v757_v3 = vand.u32 2147483647, %v725_v63 }
  0xcc   : > { %v758_v10 = vand.u32 2147483647, %v726_v0 }
  0xcd   : > { %v784_v5 = vpack.c.bf16 %v757_v3, %v756_v2  ;;  %v389_v25 = vpop.permute.xlu0 %388 }
  0xce   : > { %v559_v6 = vpop.permute.xlu1 %558  ;;  %v494_v28 = vmul.f32 %v1762_v49, %v389_v25  ;;  %v667_v25 = vmul.f32 %v1757_v47, %v1748_v43  ;;  %v1605_v43 = vld [vmem:[%s2070_s5 + $0x8] sm:$0xff]  }
  0xcf   : > { %v656_v8 = vmul.f32 %v1757_v47, %v559_v6  ;;  %1498 = vmatprep.mubr.msk.bf16.mxu0 %vm819_vm0, %v784_v5 }
  0xd0   : > { %v691_v33 = vadd.f32 %v659_v27, %v494_v28 }
  0xd1   : > { %v688_v9 = vadd.f32 %v656_v8, %v491_v36  ;;  %v404_v53 = vpop.permute.xlu0 %403 }
  0xd2   : > { %v730_v40 = vadd.f32 %v1775_v61, %v691_v33  ;;  %v497_v54 = vmul.f32 %v1762_v49, %v404_v53 }
  0xd3   : > { %v727_v11 = vadd.f32 %v1775_v61, %v688_v9  ;;  %v379_v12 = vpop.permute.xlu1 %378 }
  0xd4   : > { %v492_v16 = vmul.f32 %v1762_v49, %v379_v12  ;;  %v762_v45 = vand.u32 2147483647, %v730_v40 }
  0xd5   : > { %v759_v13 = vand.u32 2147483647, %v727_v11  ;;  %v409_v59 = vpop.permute.xlu0 %408 }
  0xd6   : > { %v498_v62 = vmul.f32 %v1762_v49, %v409_v59 }
  0xd7   : > { %v785_v14 = vpack.c.bf16 %v759_v13, %v758_v10 }
  0xd8   : > { %v563_v15 = vpop.permute.xlu1 %562  ;;  %v695_v4 = vadd.f32 %v663_v60, %v498_v62  ;;  %v671_v60 = vmul.f32 %v1757_v47, %v1751_v46 }
  0xd9   : > { %v657_v17 = vmul.f32 %v1757_v47, %v563_v15  ;;  %1499 = vmatmul.mubr.msk.bf16.gmra.mrb[8].mxu0 %vm819_vm0, %v785_v14 }
  0xda   : > { %v734_v8 = vadd.f32 %v1775_v61, %v695_v4 }
  0xdb   : > { %v689_v20 = vadd.f32 %v657_v17, %v492_v16  ;;  %v424_v17 = vpop.permute.xlu0 %423 }
  0xdc   : > { %v567_v21 = vpop.permute.xlu1 %566  ;;  %v766_v11 = vand.u32 2147483647, %v734_v8 }
  0xdd   : > { %v658_v22 = vmul.f32 %v1757_v47, %v567_v21  ;;  %v728_v23 = vadd.f32 %v1775_v61, %v689_v20  ;;  %v501_v20 = vmul.f32 %v1762_v49, %v424_v17 }
  0xdf   : > { %v690_v24 = vadd.f32 %v658_v22, %v493_v19  ;;  %v760_v31 = vand.u32 2147483647, %v728_v23 }
  0xe1   : > { %v729_v29 = vadd.f32 %v1775_v61, %v690_v24  ;;  %v394_v30 = vpop.permute.xlu1 %393  ;;  %v429_v24 = vpop.permute.xlu0 %428 }
  0xe2   : > { %v495_v35 = vmul.f32 %v1762_v49, %v394_v30  ;;  %v502_v27 = vmul.f32 %v1762_v49, %v429_v24 }
  0xe3   : > { %v761_v32 = vand.u32 2147483647, %v729_v29 }
  0xe4   : > { %v699_v33 = vadd.f32 %v667_v25, %v502_v27 }
  0xe5   : > { %v786_v34 = vpack.c.bf16 %v761_v32, %v760_v31  ;;  %v1604_v32 = vld [vmem:[%s2070_s5] sm:$0xff]  }
  0xe6   : > { %v575_v37 = vpop.permute.xlu1 %574  ;;  %1522 = vmatprep.subr.bf16.mxu1 %v1604_v32  ;;  %v738_v40 = vadd.f32 %v1775_v61, %v699_v33 }
  0xe7   : > { %v660_v38 = vmul.f32 %v1757_v47, %v575_v37  ;;  %1502 = vmatprep.mubr.msk.bf16.mxu0 %vm819_vm0, %v786_v34  ;;  %1523 = vmatpush3.bf16.msra.mxu1 %v1604_v32 }
  0xe8   : > { %1524 = vmatprep.subr.bf16.mxu1 %v1605_v43 }
  0xe9   : > { %v692_v42 = vadd.f32 %v660_v38, %v495_v35 }
  0xeb   : > { %v731_v39 = vadd.f32 %v1775_v61, %v692_v42  ;;  %v399_v44 = vpop.permute.xlu1 %398  ;;  %1525 = vmatpush3.bf16.msra.mxu1 %v1605_v43 }
  0xec   : > { %v496_v51 = vmul.f32 %v1762_v49, %v399_v44 }
  0xed   : > { %v763_v48 = vand.u32 2147483647, %v731_v39 }
  0xef   : > { %v787_v26 = vpack.c.bf16 %v763_v48, %v762_v45  ;;  %v770_v45 = vand.u32 2147483647, %v738_v40 }
  0xf0   : > { %v579_v50 = vpop.permute.xlu1 %578 }
  0xf1   : > { %v661_v52 = vmul.f32 %v1757_v47, %v579_v50  ;;  %1503 = vmatmul.mubr.msk.bf16.gmra.mrb[12].mxu0 %vm819_vm0, %v787_v26  ;;  %v444_v50 = vpop.permute.xlu0 %443 }
  0xf3   : > { %v693_v55 = vadd.f32 %v661_v52, %v496_v51 }
  0xf4   : > { %v583_v56 = vpop.permute.xlu1 %582 }
  0xf5   : > { %v662_v57 = vmul.f32 %v1757_v47, %v583_v56  ;;  %v732_v58 = vadd.f32 %v1775_v61, %v693_v55  ;;  %v505_v56 = vmul.f32 %v1762_v49, %v444_v50 }
  0xf7   : > { %v694_v7 = vadd.f32 %v662_v57, %v497_v54  ;;  %v764_v2 = vand.u32 2147483647, %v732_v58  ;;  %v449_v58 = vpop.permute.xlu0 %448 }
  0xf8   : > { %v506_v62 = vmul.f32 %v1762_v49, %v449_v58 }
  0xf9   : > { %v733_v63 = vadd.f32 %v1775_v61, %v694_v7  ;;  %v414_v1 = vpop.permute.xlu1 %413 }
  0xfa   : > { %v499_v0 = vmul.f32 %v1762_v49, %v414_v1  ;;  %v703_v4 = vadd.f32 %v671_v60, %v506_v62 }
  0xfb   : > { %v765_v3 = vand.u32 2147483647, %v733_v63  ;;  %v464_v46 = vpop.permute.xlu0 %463 }
  0xfc   : > { %v742_v8 = vadd.f32 %v1775_v61, %v703_v4 }
  0xfd   : > { %v788_v5 = vpack.c.bf16 %v765_v3, %v764_v2 }
  0xfe   : > { %v591_v6 = vpop.permute.xlu1 %590 }
  0xff   : > { %v664_v36 = vmul.f32 %v1757_v47, %v591_v6  ;;  %1506 = vmatprep.mubr.msk.bf16.mxu0 %vm819_vm0, %v788_v5 }
 0x101   : > { %v696_v9 = vadd.f32 %v664_v36, %v499_v0 }
 0x103   : > { %v735_v41 = vadd.f32 %v1775_v61, %v696_v9  ;;  %v419_v10 = vpop.permute.xlu1 %418 }
 0x104   : > { %v500_v15 = vmul.f32 %v1762_v49, %v419_v10 }
 0x105   : > { %v767_v12 = vand.u32 2147483647, %v735_v41 }
 0x107   : > { %v789_v13 = vpack.c.bf16 %v767_v12, %v766_v11  ;;  %v774_v11 = vand.u32 2147483647, %v742_v8 }
 0x108   : > { %v595_v14 = vpop.permute.xlu1 %594 }
 0x109   : > { %v665_v16 = vmul.f32 %v1757_v47, %v595_v14  ;;  %1507 = vmatmul.mubr.msk.bf16.gmra.mrb[16].mxu0 %vm819_vm0, %v789_v13  ;;  %v469_v14 = vpop.permute.xlu0 %468 }
 0x10a   : > { %v510_v25 = vmul.f32 %v1762_v49, %v469_v14 }
 0x10b   : > { %v697_v18 = vadd.f32 %v665_v16, %v500_v15 }
 0x10c   : > { %v599_v19 = vpop.permute.xlu1 %598 }
 0x10d   : > { %v666_v21 = vmul.f32 %v1757_v47, %v599_v19  ;;  %v736_v22 = vadd.f32 %v1775_v61, %v697_v18 }
 0x10f   : > { %v698_v23 = vadd.f32 %v666_v21, %v501_v20  ;;  %v768_v30 = vand.u32 2147483647, %v736_v22  ;;  %v509_v20 = vmul.f32 %v1762_v49, %v464_v46  ;;  %v635_v22 = vpop.permute.xlu0 %634 }
 0x110   : > { %v675_v27 = vmul.f32 %v1757_v47, %v635_v22 }
 0x111   : > { %v737_v28 = vadd.f32 %v1775_v61, %v698_v23  ;;  %v434_v29 = vpop.permute.xlu1 %433 }
 0x112   : > { %v503_v35 = vmul.f32 %v1762_v49, %v434_v29  ;;  %v707_v32 = vadd.f32 %v675_v27, %v510_v25 }
 0x113   : > { %v769_v31 = vand.u32 2147483647, %v737_v28 }
 0x115   : > { %v790_v34 = vpack.c.bf16 %v769_v31, %v768_v30 }
 0x116   : > { %v607_v37 = vpop.permute.xlu1 %606 }
 0x117   : > { %v668_v38 = vmul.f32 %v1757_v47, %v607_v37  ;;  %1510 = vmatprep.mubr.msk.bf16.mxu0 %vm819_vm0, %v790_v34 }
 0x119   : > { %v700_v42 = vadd.f32 %v668_v38, %v503_v35  ;;  %v746_v38 = vadd.f32 %v1775_v61, %v707_v32 }
 0x11b   : > { %v739_v39 = vadd.f32 %v1775_v61, %v700_v42  ;;  %v439_v44 = vpop.permute.xlu1 %438  ;;  %v778_v42 = vand.u32 2147483647, %v746_v38 }
 0x11c   : > { %v504_v52 = vmul.f32 %v1762_v49, %v439_v44 }
 0x11d   : > { %v771_v48 = vand.u32 2147483647, %v739_v39 }
 0x11f   : > { %v791_v26 = vpack.c.bf16 %v771_v48, %v770_v45  ;;  %v1904_v45 = vld [vmem:[%s2069_s4] ss:$0 sm:$0xff] }
 0x120   : > { %v611_v51 = vpop.permute.xlu1 %610 }
 0x121   : > { %v669_v53 = vmul.f32 %v1757_v47, %v611_v51  ;;  %1511 = vmatmul.mubr.msk.bf16.gmra.mrb[20].mxu0 %vm819_vm0, %v791_v26 }
 0x123   : > { %v701_v54 = vadd.f32 %v669_v53, %v504_v52 }
 0x124   : > { %v615_v55 = vpop.permute.xlu1 %614 }
 0x125   : > { %v670_v57 = vmul.f32 %v1757_v47, %v615_v55  ;;  %v740_v7 = vadd.f32 %v1775_v61, %v701_v54 }
 0x127   : > { %v702_v59 = vadd.f32 %v670_v57, %v505_v56  ;;  %v772_v2 = vand.u32 2147483647, %v740_v7 }
 0x129   : > { %v741_v63 = vadd.f32 %v1775_v61, %v702_v59  ;;  %v454_v1 = vpop.permute.xlu1 %453 }
 0x12a   : > { %v507_v0 = vmul.f32 %v1762_v49, %v454_v1 }
 0x12b   : > { %v773_v3 = vand.u32 2147483647, %v741_v63 }
 0x12d   : > { %v792_v5 = vpack.c.bf16 %v773_v3, %v772_v2 }
 0x12e   : > { %v623_v6 = vpop.permute.xlu1 %622 }
 0x12f   : > { %v672_v36 = vmul.f32 %v1757_v47, %v623_v6  ;;  %1514 = vmatprep.mubr.msk.bf16.mxu0 %vm819_vm0, %v792_v5 }
 0x131   : > { %v704_v9 = vadd.f32 %v672_v36, %v507_v0 }
 0x133   : > { %v743_v41 = vadd.f32 %v1775_v61, %v704_v9  ;;  %v459_v10 = vpop.permute.xlu1 %458 }
 0x134   : > { %v508_v16 = vmul.f32 %v1762_v49, %v459_v10 }
 0x135   : > { %v775_v12 = vand.u32 2147483647, %v743_v41 }
 0x137   : > { %v793_v13 = vpack.c.bf16 %v775_v12, %v774_v11 }
 0x138   : > { %v627_v15 = vpop.permute.xlu1 %626 }
 0x139   : > { %v673_v17 = vmul.f32 %v1757_v47, %v627_v15  ;;  %1515 = vmatmul.mubr.msk.bf16.gmra.mrb[24].mxu0 %vm819_vm0, %v793_v13 }
 0x13b   : > { %v705_v18 = vadd.f32 %v673_v17, %v508_v16 }
 0x13c   : > { %v631_v19 = vpop.permute.xlu1 %630 }
 0x13d   : > { %v674_v21 = vmul.f32 %v1757_v47, %v631_v19  ;;  %v744_v23 = vadd.f32 %v1775_v61, %v705_v18 }
 0x13f   : > { %v706_v24 = vadd.f32 %v674_v21, %v509_v20  ;;  %v776_v30 = vand.u32 2147483647, %v744_v23 }
 0x141   : > { %v745_v28 = vadd.f32 %v1775_v61, %v706_v24  ;;  %v474_v29 = vpop.permute.xlu1 %473 }
 0x142   : > { %v511_v37 = vmul.f32 %v1762_v49, %v474_v29 }
 0x143   : > { %v777_v31 = vand.u32 2147483647, %v745_v28 }
 0x145   : > { %v794_v33 = vpack.c.bf16 %v777_v31, %v776_v30 }
 0x146   : > { %v639_v34 = vpop.permute.xlu1 %638 }
 0x147   : > { %v676_v35 = vmul.f32 %v1757_v47, %v639_v34  ;;  %1518 = vmatprep.mubr.msk.bf16.mxu0 %vm819_vm0, %v794_v33 }
 0x149   : > { %v708_v43 = vadd.f32 %v676_v35, %v511_v37 }
 0x14b   : > { %v747_v40 = vadd.f32 %v1775_v61, %v708_v43 }
 0x14d   : > { %v779_v39 = vand.u32 2147483647, %v747_v40 }
 0x14f   : > { %v795_v44 = vpack.c.bf16 %v779_v39, %v778_v42 }
 0x151   : > { %1519 = vmatmul.mubr.msk.bf16.gmra.mrb[28].mxu0 %vm819_vm0, %v795_v44 }
 0x193   : > { %v1492_v49 = vpop.f32.mrb[0].mxu0 }
 0x194   : > { %v911_v47 = vadd.f32 %v1492_v49, %v1904_v45  ;;  %v902_v48 = vpop.f32.mrb[1].mxu0 }
 0x195   : > { %v903_v26 = vadd.f32 %v1904_v45, %v902_v48  ;;  %v1493_v50 = vpop.f32.mrb[2].mxu0 }
 0x196   : > { %v914_v51 = vadd.f32 %v1493_v50, %v1904_v45  ;;  %v905_v61 = vpop.f32.mrb[3].mxu0  ;;  %v1031_v53 = vand.u32 2147483647, %v911_v47 }
 0x197   : > { %v906_v52 = vadd.f32 %v1904_v45, %v905_v61  ;;  %v1029_v55 = vand.u32 2147483647, %v903_v26 }
 0x198   : > { %v1032_v54 = vand.u32 2147483647, %v914_v51 }
 0x199   : > { %v1030_v56 = vand.u32 2147483647, %v906_v52 }
 0x19a   : > { %v1062_v57 = vpack.c.bf16 %v1032_v54, %v1031_v53 }
 0x19b   : > { %v1496_v58 = vpop.f32.mrb[4].mxu0  ;;  %v1061_v7 = vpack.c.bf16 %v1030_v56, %v1029_v55 }
 0x19c   : > { %v927_v59 = vadd.f32 %v1496_v58, %v1904_v45  ;;  %v918_v60 = vpop.f32.mrb[5].mxu0 }
 0x19d   : > { %v919_v62 = vadd.f32 %v1904_v45, %v918_v60  ;;  %v1497_v63 = vpop.f32.mrb[6].mxu0  ;;  %1526 = vmatprep.mubr.msk.bf16.mxu1 %vm819_vm0, %v1061_v7 }
 0x19e   : > { %v930_v1 = vadd.f32 %v1497_v63, %v1904_v45  ;;  %v921_v2 = vpop.f32.mrb[7].mxu0  ;;  %1527 = vmatmul.mubr.msk.bf16.vlgmr.msra.gmra.mrb[0].mxu1 %vm819_vm0, %v1062_v57  ;;  %v1035_v4 = vand.u32 2147483647, %v927_v59 }
 0x19f   : > { %v922_v3 = vadd.f32 %v1904_v45, %v921_v2  ;;  %v1033_v6 = vand.u32 2147483647, %v919_v62 }
 0x1a0   : > { %v1036_v5 = vand.u32 2147483647, %v930_v1 }
 0x1a1   : > { %v1034_v0 = vand.u32 2147483647, %v922_v3 }
 0x1a2   : > { %v1064_v36 = vpack.c.bf16 %v1036_v5, %v1035_v4 }
 0x1a3   : > { %v1063_v8 = vpack.c.bf16 %v1034_v0, %v1033_v6 }
 0x1a5   : > { %1530 = vmatprep.mubr.msk.bf16.mxu1 %vm819_vm0, %v1063_v8 }
 0x1a6   : > { %1531 = vmatmul.mubr.msk.bf16.gmra.mrb[4].mxu1 %vm819_vm0, %v1064_v36 }
 0x1ac   : > { %v1500_v9 = vpop.f32.mrb[8].mxu0 }
 0x1ad   : > { %v943_v46 = vadd.f32 %v1500_v9, %v1904_v45  ;;  %v934_v41 = vpop.f32.mrb[9].mxu0 }
 0x1ae   : > { %v935_v10 = vadd.f32 %v1904_v45, %v934_v41  ;;  %v1501_v11 = vpop.f32.mrb[10].mxu0 }
 0x1af   : > { %v946_v12 = vadd.f32 %v1501_v11, %v1904_v45  ;;  %v937_v13 = vpop.f32.mrb[11].mxu0  ;;  %v1039_v15 = vand.u32 2147483647, %v943_v46 }
 0x1b0   : > { %v938_v14 = vadd.f32 %v1904_v45, %v937_v13  ;;  %v1037_v17 = vand.u32 2147483647, %v935_v10 }
 0x1b1   : > { %v1040_v16 = vand.u32 2147483647, %v946_v12 }
 0x1b2   : > { %v1038_v18 = vand.u32 2147483647, %v938_v14 }
 0x1b3   : > { %v1066_v19 = vpack.c.bf16 %v1040_v16, %v1039_v15 }
 0x1b4   : > { %v1065_v20 = vpack.c.bf16 %v1038_v18, %v1037_v17 }
 0x1b6   : > { %1534 = vmatprep.mubr.msk.bf16.mxu1 %vm819_vm0, %v1065_v20 }
 0x1b7   : > { %1535 = vmatmul.mubr.msk.bf16.gmra.mrb[8].mxu1 %vm819_vm0, %v1066_v19 }
 0x1c4   : > { %v1504_v21 = vpop.f32.mrb[12].mxu0 }
 0x1c5   : > { %v959_v22 = vadd.f32 %v1504_v21, %v1904_v45  ;;  %v950_v23 = vpop.f32.mrb[13].mxu0 }
 0x1c6   : > { %v951_v24 = vadd.f32 %v1904_v45, %v950_v23  ;;  %v1505_v25 = vpop.f32.mrb[14].mxu0 }
 0x1c7   : > { %v962_v27 = vadd.f32 %v1505_v25, %v1904_v45  ;;  %v953_v28 = vpop.f32.mrb[15].mxu0  ;;  %v1043_v30 = vand.u32 2147483647, %v959_v22 }
 0x1c8   : > { %v954_v29 = vadd.f32 %v1904_v45, %v953_v28  ;;  %v1041_v32 = vand.u32 2147483647, %v951_v24 }
 0x1c9   : > { %v1044_v31 = vand.u32 2147483647, %v962_v27 }
 0x1ca   : > { %v1042_v33 = vand.u32 2147483647, %v954_v29  ;;  %v1957_v29 = vld [vmem:[%s2071_s6] ss:$0 sm:$0xff] }
 0x1cb   : > { %v1068_v34 = vpack.c.bf16 %v1044_v31, %v1043_v30 }
 0x1cc   : > { %v1067_v37 = vpack.c.bf16 %v1042_v33, %v1041_v32 }
 0x1ce   : > { %1538 = vmatprep.mubr.msk.bf16.mxu1 %vm819_vm0, %v1067_v37 }
 0x1cf   : > { %1539 = vmatmul.mubr.msk.bf16.gmra.mrb[12].mxu1 %vm819_vm0, %v1068_v34 }
 0x1dc   : > { %v1508_v35 = vpop.f32.mrb[16].mxu0 }
 0x1dd   : > { %v975_v38 = vadd.f32 %v1508_v35, %v1904_v45  ;;  %v966_v43 = vpop.f32.mrb[17].mxu0 }
 0x1de   : > { %v967_v40 = vadd.f32 %v1904_v45, %v966_v43  ;;  %v1509_v42 = vpop.f32.mrb[18].mxu0 }
 0x1df   : > { %v978_v39 = vadd.f32 %v1509_v42, %v1904_v45  ;;  %v969_v44 = vpop.f32.mrb[19].mxu0  ;;  %v1047_v47 = vand.u32 2147483647, %v975_v38 }
 0x1e0   : > { %v970_v49 = vadd.f32 %v1904_v45, %v969_v44  ;;  %v1045_v26 = vand.u32 2147483647, %v967_v40 }
 0x1e1   : > { %v1048_v48 = vand.u32 2147483647, %v978_v39 }
 0x1e2   : > { %v1046_v50 = vand.u32 2147483647, %v970_v49 }
 0x1e3   : > { %v1070_v51 = vpack.c.bf16 %v1048_v48, %v1047_v47 }
 0x1e4   : > { %v1069_v61 = vpack.c.bf16 %v1046_v50, %v1045_v26 }
 0x1e6   : > { %1542 = vmatprep.mubr.msk.bf16.mxu1 %vm819_vm0, %v1069_v61 }
 0x1e7   : > { %1543 = vmatmul.mubr.msk.bf16.gmra.mrb[16].mxu1 %vm819_vm0, %v1070_v51 }
 0x1f4   : > { %v1512_v52 = vpop.f32.mrb[20].mxu0 }
 0x1f5   : > { %v991_v53 = vadd.f32 %v1512_v52, %v1904_v45  ;;  %v982_v54 = vpop.f32.mrb[21].mxu0 }
 0x1f6   : > { %v983_v55 = vadd.f32 %v1904_v45, %v982_v54  ;;  %v1513_v56 = vpop.f32.mrb[22].mxu0 }
 0x1f7   : > { %v994_v57 = vadd.f32 %v1513_v56, %v1904_v45  ;;  %v985_v58 = vpop.f32.mrb[23].mxu0  ;;  %v1051_v59 = vand.u32 2147483647, %v991_v53 }
 0x1f8   : > { %v986_v7 = vadd.f32 %v1904_v45, %v985_v58  ;;  %v1049_v62 = vand.u32 2147483647, %v983_v55 }
 0x1f9   : > { %v1052_v60 = vand.u32 2147483647, %v994_v57 }
 0x1fa   : > { %v1050_v63 = vand.u32 2147483647, %v986_v7 }
 0x1fb   : > { %v1072_v1 = vpack.c.bf16 %v1052_v60, %v1051_v59 }
 0x1fc   : > { %v1071_v2 = vpack.c.bf16 %v1050_v63, %v1049_v62 }
 0x1fe   : > { %1546 = vmatprep.mubr.msk.bf16.mxu1 %vm819_vm0, %v1071_v2 }
 0x1ff   : > { %1547 = vmatmul.mubr.msk.bf16.gmra.mrb[20].mxu1 %vm819_vm0, %v1072_v1 }
 0x20c   : > { %v1516_v3 = vpop.f32.mrb[24].mxu0 }
 0x20d   : > { %v1007_v4 = vadd.f32 %v1516_v3, %v1904_v45  ;;  %v998_v5 = vpop.f32.mrb[25].mxu0 }
 0x20e   : > { %v999_v6 = vadd.f32 %v1904_v45, %v998_v5  ;;  %v1517_v0 = vpop.f32.mrb[26].mxu0 }
 0x20f   : > { %v1010_v36 = vadd.f32 %v1517_v0, %v1904_v45  ;;  %v1001_v8 = vpop.f32.mrb[27].mxu0  ;;  %v1055_v46 = vand.u32 2147483647, %v1007_v4 }
 0x210   : > { %v1002_v9 = vadd.f32 %v1904_v45, %v1001_v8  ;;  %v1053_v10 = vand.u32 2147483647, %v999_v6 }
 0x211   : > { %v1056_v41 = vand.u32 2147483647, %v1010_v36 }
 0x212   : > { %v1054_v11 = vand.u32 2147483647, %v1002_v9 }
 0x213   : > { %v1074_v12 = vpack.c.bf16 %v1056_v41, %v1055_v46 }
 0x214   : > { %v1073_v13 = vpack.c.bf16 %v1054_v11, %v1053_v10 }
 0x216   : > { %1550 = vmatprep.mubr.msk.bf16.mxu1 %vm819_vm0, %v1073_v13 }
 0x217   : > { %1551 = vmatmul.mubr.msk.bf16.gmra.mrb[24].mxu1 %vm819_vm0, %v1074_v12 }
 0x224   : > { %v1520_v14 = vpop.f32.mrb[28].mxu0 }
 0x225   : > { %v1023_v15 = vadd.f32 %v1520_v14, %v1904_v45  ;;  %v1014_v16 = vpop.f32.mrb[29].mxu0 }
 0x226   : > { %v1015_v17 = vadd.f32 %v1904_v45, %v1014_v16  ;;  %v1521_v18 = vpop.f32.mrb[30].mxu0 }
 0x227   : > { %v1026_v19 = vadd.f32 %v1521_v18, %v1904_v45  ;;  %v1017_v20 = vpop.f32.mrb[31].mxu0  ;;  %v1059_v22 = vand.u32 2147483647, %v1023_v15 }
 0x228   : > { %v1018_v21 = vadd.f32 %v1904_v45, %v1017_v20  ;;  %v1057_v24 = vand.u32 2147483647, %v1015_v17 }
 0x229   : > { %v1060_v23 = vand.u32 2147483647, %v1026_v19 }
 0x22a   : > { %v1058_v25 = vand.u32 2147483647, %v1018_v21 }
 0x22b   : > { %v1076_v27 = vpack.c.bf16 %v1060_v23, %v1059_v22 }
 0x22c   : > { %v1075_v28 = vpack.c.bf16 %v1058_v25, %v1057_v24 }
 0x22e   : > { %1554 = vmatprep.mubr.msk.bf16.mxu1 %vm819_vm0, %v1075_v28 }
 0x22f   : > { %1555 = vmatmul.mubr.msk.bf16.gmra.mrb[28].mxu1 %vm819_vm0, %v1076_v27 }
 0x271   : > { %v1528_v45 = vpop.f32.mrb[0].mxu1 }
 0x272   : > { %v1191_v30 = vadd.f32 %v1528_v45, %v1957_v29  ;;  %v1182_v31 = vpop.f32.mrb[1].mxu1 }
 0x273   : > { %v1183_v32 = vadd.f32 %v1957_v29, %v1182_v31  ;;  %v1529_v33 = vpop.f32.mrb[2].mxu1 }
 0x274   : > { %1312 = vst.msk [vmem:[%s1964_s8 + $0x10] sm:$0xff] %vm1309_vm1, %v1191_v30  ;;  %v1194_v34 = vadd.f32 %v1529_v33, %v1957_v29  ;;  %v1185_v37 = vpop.f32.mrb[3].mxu1 }
 0x275   : > { %1310 = vst.msk [vmem:[%s1964_s8] sm:$0xff] %vm1309_vm1, %v1183_v32  ;;  %v1186_v35 = vadd.f32 %v1957_v29, %v1185_v37 }
 0x276   : > { %1313 = vst.msk [vmem:[%s1964_s8 + $0x18] sm:$0xff] %vm1309_vm1, %v1194_v34 }
 0x277   : > { %1311 = vst.msk [vmem:[%s1964_s8 + $0x8] sm:$0xff] %vm1309_vm1, %v1186_v35 }
 0x279   : > { %v1532_v38 = vpop.f32.mrb[4].mxu1 }
 0x27a   : > { %v1207_v43 = vadd.f32 %v1532_v38, %v1957_v29  ;;  %v1198_v40 = vpop.f32.mrb[5].mxu1 }
 0x27b   : > { %v1199_v42 = vadd.f32 %v1957_v29, %v1198_v40  ;;  %v1533_v39 = vpop.f32.mrb[6].mxu1 }
 0x27c   : > { %1316 = vst.msk [vmem:[%s1964_s8 + $0x30] sm:$0xff] %vm1309_vm1, %v1207_v43  ;;  %v1210_v44 = vadd.f32 %v1533_v39, %v1957_v29  ;;  %v1201_v49 = vpop.f32.mrb[7].mxu1 }
 0x27d   : > { %1314 = vst.msk [vmem:[%s1964_s8 + $0x20] sm:$0xff] %vm1309_vm1, %v1199_v42  ;;  %v1202_v47 = vadd.f32 %v1957_v29, %v1201_v49 }
 0x27e   : > { %1317 = vst.msk [vmem:[%s1964_s8 + $0x38] sm:$0xff] %vm1309_vm1, %v1210_v44 }
 0x27f   : > { %1315 = vst.msk [vmem:[%s1964_s8 + $0x28] sm:$0xff] %vm1309_vm1, %v1202_v47 }
 0x28a   : > { %v1536_v48 = vpop.f32.mrb[8].mxu1 }
 0x28b   : > { %v1223_v26 = vadd.f32 %v1536_v48, %v1957_v29  ;;  %v1214_v50 = vpop.f32.mrb[9].mxu1 }
 0x28c   : > { %v1215_v51 = vadd.f32 %v1957_v29, %v1214_v50  ;;  %v1537_v61 = vpop.f32.mrb[10].mxu1 }
 0x28d   : > { %1320 = vst.msk [vmem:[%s1964_s8 + $0x50] sm:$0xff] %vm1309_vm1, %v1223_v26  ;;  %v1226_v52 = vadd.f32 %v1537_v61, %v1957_v29  ;;  %v1217_v53 = vpop.f32.mrb[11].mxu1 }
 0x28e   : > { %1318 = vst.msk [vmem:[%s1964_s8 + $0x40] sm:$0xff] %vm1309_vm1, %v1215_v51  ;;  %v1218_v54 = vadd.f32 %v1957_v29, %v1217_v53 }
 0x28f   : > { %1321 = vst.msk [vmem:[%s1964_s8 + $0x58] sm:$0xff] %vm1309_vm1, %v1226_v52 }
 0x290   : > { %1319 = vst.msk [vmem:[%s1964_s8 + $0x48] sm:$0xff] %vm1309_vm1, %v1218_v54 }
 0x2a2   : > { %v1540_v55 = vpop.f32.mrb[12].mxu1 }
 0x2a3   : > { %v1239_v56 = vadd.f32 %v1540_v55, %v1957_v29  ;;  %v1230_v57 = vpop.f32.mrb[13].mxu1 }
 0x2a4   : > { %v1231_v58 = vadd.f32 %v1957_v29, %v1230_v57  ;;  %v1541_v7 = vpop.f32.mrb[14].mxu1 }
 0x2a5   : > { %1324 = vst.msk [vmem:[%s1964_s8 + $0x70] sm:$0xff] %vm1309_vm1, %v1239_v56  ;;  %v1242_v59 = vadd.f32 %v1541_v7, %v1957_v29  ;;  %v1233_v60 = vpop.f32.mrb[15].mxu1 }
 0x2a6   : > { %1322 = vst.msk [vmem:[%s1964_s8 + $0x60] sm:$0xff] %vm1309_vm1, %v1231_v58  ;;  %v1234_v62 = vadd.f32 %v1957_v29, %v1233_v60 }
 0x2a7   : > { %1325 = vst.msk [vmem:[%s1964_s8 + $0x78] sm:$0xff] %vm1309_vm1, %v1242_v59 }
 0x2a8   : > { %1323 = vst.msk [vmem:[%s1964_s8 + $0x68] sm:$0xff] %vm1309_vm1, %v1234_v62 }
 0x2ba   : > { %v1544_v63 = vpop.f32.mrb[16].mxu1 }
 0x2bb   : > { %v1255_v1 = vadd.f32 %v1544_v63, %v1957_v29  ;;  %v1246_v2 = vpop.f32.mrb[17].mxu1 }
 0x2bc   : > { %v1247_v3 = vadd.f32 %v1957_v29, %v1246_v2  ;;  %v1545_v4 = vpop.f32.mrb[18].mxu1 }
 0x2bd   : > { %1328 = vst.msk [vmem:[%s1964_s8 + $0x90] sm:$0xff] %vm1309_vm1, %v1255_v1  ;;  %v1258_v5 = vadd.f32 %v1545_v4, %v1957_v29  ;;  %v1249_v6 = vpop.f32.mrb[19].mxu1 }
 0x2be   : > { %1326 = vst.msk [vmem:[%s1964_s8 + $0x80] sm:$0xff] %vm1309_vm1, %v1247_v3  ;;  %v1250_v0 = vadd.f32 %v1957_v29, %v1249_v6 }
 0x2bf   : > { %1329 = vst.msk [vmem:[%s1964_s8 + $0x98] sm:$0xff] %vm1309_vm1, %v1258_v5 }
 0x2c0   : > { %1327 = vst.msk [vmem:[%s1964_s8 + $0x88] sm:$0xff] %vm1309_vm1, %v1250_v0 }
 0x2d2   : > { %v1548_v36 = vpop.f32.mrb[20].mxu1 }
 0x2d3   : > { %v1271_v8 = vadd.f32 %v1548_v36, %v1957_v29  ;;  %v1262_v9 = vpop.f32.mrb[21].mxu1 }
 0x2d4   : > { %v1263_v46 = vadd.f32 %v1957_v29, %v1262_v9  ;;  %v1549_v41 = vpop.f32.mrb[22].mxu1 }
 0x2d5   : > { %1332 = vst.msk [vmem:[%s1964_s8 + $0xb0] sm:$0xff] %vm1309_vm1, %v1271_v8  ;;  %v1274_v10 = vadd.f32 %v1549_v41, %v1957_v29  ;;  %v1265_v11 = vpop.f32.mrb[23].mxu1 }
 0x2d6   : > { %1330 = vst.msk [vmem:[%s1964_s8 + $0xa0] sm:$0xff] %vm1309_vm1, %v1263_v46  ;;  %v1266_v12 = vadd.f32 %v1957_v29, %v1265_v11 }
 0x2d7   : > { %1333 = vst.msk [vmem:[%s1964_s8 + $0xb8] sm:$0xff] %vm1309_vm1, %v1274_v10 }
 0x2d8   : > { %1331 = vst.msk [vmem:[%s1964_s8 + $0xa8] sm:$0xff] %vm1309_vm1, %v1266_v12 }
 0x2ea   : > { %v1552_v13 = vpop.f32.mrb[24].mxu1 }
 0x2eb   : > { %v1287_v14 = vadd.f32 %v1552_v13, %v1957_v29  ;;  %v1278_v15 = vpop.f32.mrb[25].mxu1 }
 0x2ec   : > { %v1279_v16 = vadd.f32 %v1957_v29, %v1278_v15  ;;  %v1553_v17 = vpop.f32.mrb[26].mxu1 }
 0x2ed   : > { %1336 = vst.msk [vmem:[%s1964_s8 + $0xd0] sm:$0xff] %vm1309_vm1, %v1287_v14  ;;  %v1290_v18 = vadd.f32 %v1553_v17, %v1957_v29  ;;  %v1281_v19 = vpop.f32.mrb[27].mxu1 }
 0x2ee   : > { %1334 = vst.msk [vmem:[%s1964_s8 + $0xc0] sm:$0xff] %vm1309_vm1, %v1279_v16  ;;  %v1282_v20 = vadd.f32 %v1957_v29, %v1281_v19 }
 0x2ef   : > { %1337 = vst.msk [vmem:[%s1964_s8 + $0xd8] sm:$0xff] %vm1309_vm1, %v1290_v18 }
 0x2f0   : > { %1335 = vst.msk [vmem:[%s1964_s8 + $0xc8] sm:$0xff] %vm1309_vm1, %v1282_v20 }
 0x302   : > { %v1556_v21 = vpop.f32.mrb[28].mxu1 }
 0x303   : > { %v1303_v22 = vadd.f32 %v1556_v21, %v1957_v29  ;;  %v1294_v23 = vpop.f32.mrb[29].mxu1 }
 0x304   : > { %v1295_v24 = vadd.f32 %v1957_v29, %v1294_v23  ;;  %v1557_v25 = vpop.f32.mrb[30].mxu1 }
 0x305   : > { %1340 = vst.msk [vmem:[%s1964_s8 + $0xf0] sm:$0xff] %vm1309_vm1, %v1303_v22  ;;  %v1306_v27 = vadd.f32 %v1557_v25, %v1957_v29  ;;  %v1297_v28 = vpop.f32.mrb[31].mxu1 }
 0x306   : > { %1338 = vst.msk [vmem:[%s1964_s8 + $0xe0] sm:$0xff] %vm1309_vm1, %v1295_v24  ;;  %v1298_v45 = vadd.f32 %v1957_v29, %v1297_v28 }
 0x307   : > { %1341 = vst.msk [vmem:[%s1964_s8 + $0xf8] sm:$0xff] %vm1309_vm1, %v1306_v27 }
 0x308   : > { %1339 = vst.msk [vmem:[%s1964_s8 + $0xe8] sm:$0xff] %vm1309_vm1, %v1298_v45 }
 0x309 PF: > { %s17_s24 = sadd.s32 1, %s1612_s24  }
 0x30a   : > { %p14_p4 = scmp.ge.s32.totalorder %s17_s24, 4  }
 0x30c   :  { %16 = sbr.rel (!%p14_p4) target bundleno = 1 (0x1), region = 78 }

</bundles_post_ra>
